<compile_context>
chip_gen: v7x
topology: tpu7x:2x2x1
jax: 0.10.0
libtpu: 0.0.40
codegen_flags: <defaults>
</compile_context>

<pallas_src>
import numpy as np
import jax
import jax.numpy as jnp
from jax.experimental import pallas as pl
from jax.experimental.pallas import tpu as pltpu

_LANE = 128


def _adaptive_bins(in_size, out_size):
    """PyTorch AdaptiveMaxPool bin boundaries (static Python ints)."""
    starts = [int(np.floor(i * in_size / out_size)) for i in range(out_size)]
    ends = [int(np.ceil((i + 1) * in_size / out_size)) for i in range(out_size)]
    return starts, ends


def _make_kernel(D, H, W, OD, OH, OW):
    sd, ed = _adaptive_bins(D, OD)
    sh, eh = _adaptive_bins(H, OH)
    sw, ew = _adaptive_bins(W, OW)

    def kernel(x_ref, o_ref):
        # x_ref: (D, H, W, TB) channel-last; TB channels live in the lane dim,
        # so every per-bin max below is a pure VPU elementwise max.

        # Pool along D (leading axis). Slice the ref directly per bin so we
        # only load the window we need from VMEM.
        xd = jnp.stack(
            [jnp.max(x_ref[sd[i]:ed[i]], axis=0) for i in range(OD)], axis=0)
        # (OD, H, W, TB): pool along H (still a leading axis of the tiling).
        xh = jnp.stack(
            [jnp.max(xd[:, sh[i]:eh[i]], axis=1) for i in range(OH)], axis=1)
        # (OD, OH, W, TB): pool along W last, when the tensor is already small.
        xw = jnp.stack(
            [jnp.max(xh[:, :, sw[i]:ew[i]], axis=2) for i in range(OW)], axis=2)
        # (OD, OH, OW, TB). ReLU commutes with max -> apply after pooling.
        # Dropout: identity in eval mode.
        o_ref[...] = jnp.maximum(xw, 0.0).astype(o_ref.dtype)

    return kernel


def regularize_pool(x, pool, *, target_block_bytes=2 * 1024 * 1024):
    """ReLU -> Dropout(eval) -> AdaptiveMaxPool3d(pool) on NCDHW input."""
    N, C, D, H, W = x.shape
    OD, OH, OW = pool
    NC = N * C
    itemsize = jnp.dtype(x.dtype).itemsize

    # Lane tile over the fused N*C axis. Keep each input block around
    # target_block_bytes (double-buffered this stays well under the scoped
    # VMEM limit on all of v5e / v6e / v7x; sweep upward on v5e/v6e if wanted).
    bytes_per_lane_group = D * H * W * itemsize * _LANE
    k_perf = max(1, target_block_bytes // bytes_per_lane_group)
    ncp0 = ((NC + _LANE - 1) // _LANE) * _LANE
    k = int(min(k_perf, ncp0 // _LANE))
    TB = _LANE * k
    NCp = ((ncp0 + TB - 1) // TB) * TB

    # Channel-last compute layout: (N, C, D, H, W) -> (D, H, W, N*C), padded
    # along the channel/lane axis (padded lanes are discarded afterwards).
    xt = jnp.transpose(x.reshape(NC, D, H, W), (1, 2, 3, 0))
    if NCp != NC:
        xt = jnp.pad(xt, ((0, 0), (0, 0), (0, 0), (0, NCp - NC)))

    kernel = _make_kernel(D, H, W, OD, OH, OW)
    out = pl.pallas_call(
        kernel,
        out_shape=jax.ShapeDtypeStruct((OD, OH, OW, NCp), x.dtype),
        grid=(NCp // TB,),
        in_specs=[pl.BlockSpec((D, H, W, TB), lambda i: (0, 0, 0, i))],
        out_specs=pl.BlockSpec((OD, OH, OW, TB), lambda i: (0, 0, 0, i)),
        compiler_params=pltpu.CompilerParams(
            dimension_semantics=("parallel",)),
    )(xt)

    # Back to PyTorch NCDHW: (OD, OH, OW, NCp) -> (N, C, OD, OH, OW).
    out = out[..., :NC]
    out = jnp.transpose(out, (3, 0, 1, 2)).reshape(N, C, OD, OH, OW)
    return out


def _reference_np(x, pool):
    x = np.maximum(np.asarray(x), 0.0)
    N, C, D, H, W = x.shape
    OD, OH, OW = pool
    sd, ed = _adaptive_bins(D, OD)
    sh, eh = _adaptive_bins(H, OH)
    sw, ew = _adaptive_bins(W, OW)
    out = np.zeros((N, C, OD, OH, OW), dtype=x.dtype)
    for od in range(OD):
        for oh in range(OH):
            for ow in range(OW):
                win = x[:, :, sd[od]:ed[od], sh[oh]:eh[oh], sw[ow]:ew[ow]]
                out[:, :, od, oh, ow] = win.max(axis=(2, 3, 4))
    return out


if __name__ == "__main__":
    key = jax.random.PRNGKey(0)
    # Small NCDHW input; pool sizes chosen non-divisible to exercise the
    # adaptive (uneven-window) path.
    x = jax.random.normal(key, (2, 4, 8, 16, 16), dtype=jnp.float32)
    pool = (3, 5, 7)

    y = regularize_pool(x, pool)
    y = jax.block_until_ready(y)

    ref = _reference_np(x, pool)
    np.testing.assert_allclose(np.asarray(y), ref, rtol=1e-6, atol=1e-6)

    print("KERNEL_OK")
</pallas_src>

<mosaic_0001>
module attributes {stable_mosaic.version = 11 : i64} {
  func.func @kernel(%arg0: i32, %arg1: memref<8x16x16x128xf32, #tpu.memory_space<vmem>>, %arg2: memref<3x5x7x128xf32, #tpu.memory_space<vmem>>) attributes {dimension_semantics = [#tpu.dimension_semantics<parallel>], iteration_bounds = array<i64: 1>, scalar_prefetch = 0 : i64, scratch_operands = 0 : i64, tpu.core_type = #tpu.core_type<tc>, window_params = [{transform_indices = @transform_0, window_bounds = array<i64: 8, 16, 16, 128>}, {transform_indices = @transform_1, window_bounds = array<i64: 3, 5, 7, 128>}]} {
    %c0 = arith.constant 0 : index
    %c0_0 = arith.constant 0 : index
    %c0_1 = arith.constant 0 : index
    %c0_2 = arith.constant 0 : index
    %0 = vector.load %arg1[%c0, %c0_0, %c0_1, %c0_2] : memref<8x16x16x128xf32, #tpu.memory_space<vmem>>, vector<3x16x16x128xf32>
    %cst = arith.constant dense<0xFF800000> : vector<16x16x128xf32>
    %1 = vector.multi_reduction <maximumf>, %0, %cst [0] : vector<3x16x16x128xf32> to vector<16x16x128xf32>
    %c2 = arith.constant 2 : index
    %c0_3 = arith.constant 0 : index
    %c0_4 = arith.constant 0 : index
    %c0_5 = arith.constant 0 : index
    %2 = vector.load %arg1[%c2, %c0_3, %c0_4, %c0_5] : memref<8x16x16x128xf32, #tpu.memory_space<vmem>>, vector<4x16x16x128xf32>
    %cst_6 = arith.constant dense<0xFF800000> : vector<16x16x128xf32>
    %3 = vector.multi_reduction <maximumf>, %2, %cst_6 [0] : vector<4x16x16x128xf32> to vector<16x16x128xf32>
    %c5 = arith.constant 5 : index
    %c0_7 = arith.constant 0 : index
    %c0_8 = arith.constant 0 : index
    %c0_9 = arith.constant 0 : index
    %4 = vector.load %arg1[%c5, %c0_7, %c0_8, %c0_9] : memref<8x16x16x128xf32, #tpu.memory_space<vmem>>, vector<3x16x16x128xf32>
    %cst_10 = arith.constant dense<0xFF800000> : vector<16x16x128xf32>
    %5 = vector.multi_reduction <maximumf>, %4, %cst_10 [0] : vector<3x16x16x128xf32> to vector<16x16x128xf32>
    %6 = vector.shape_cast %1 : vector<16x16x128xf32> to vector<1x16x16x128xf32>
    %7 = vector.shape_cast %3 : vector<16x16x128xf32> to vector<1x16x16x128xf32>
    %8 = vector.shape_cast %5 : vector<16x16x128xf32> to vector<1x16x16x128xf32>
    %9 = tpu.concatenate %6, %7, %8 in 0 : vector<1x16x16x128xf32>, vector<1x16x16x128xf32>, vector<1x16x16x128xf32> -> vector<3x16x16x128xf32>
    %10 = vector.extract_strided_slice %9 {offsets = [0, 0, 0, 0], sizes = [3, 4, 16, 128], strides = [1, 1, 1, 1]} : vector<3x16x16x128xf32> to vector<3x4x16x128xf32>
    %cst_11 = arith.constant dense<0xFF800000> : vector<3x16x128xf32>
    %11 = vector.multi_reduction <maximumf>, %10, %cst_11 [1] : vector<3x4x16x128xf32> to vector<3x16x128xf32>
    %12 = vector.extract_strided_slice %9 {offsets = [0, 3, 0, 0], sizes = [3, 4, 16, 128], strides = [1, 1, 1, 1]} : vector<3x16x16x128xf32> to vector<3x4x16x128xf32>
    %cst_12 = arith.constant dense<0xFF800000> : vector<3x16x128xf32>
    %13 = vector.multi_reduction <maximumf>, %12, %cst_12 [1] : vector<3x4x16x128xf32> to vector<3x16x128xf32>
    %14 = vector.extract_strided_slice %9 {offsets = [0, 6, 0, 0], sizes = [3, 4, 16, 128], strides = [1, 1, 1, 1]} : vector<3x16x16x128xf32> to vector<3x4x16x128xf32>
    %cst_13 = arith.constant dense<0xFF800000> : vector<3x16x128xf32>
    %15 = vector.multi_reduction <maximumf>, %14, %cst_13 [1] : vector<3x4x16x128xf32> to vector<3x16x128xf32>
    %16 = vector.extract_strided_slice %9 {offsets = [0, 9, 0, 0], sizes = [3, 4, 16, 128], strides = [1, 1, 1, 1]} : vector<3x16x16x128xf32> to vector<3x4x16x128xf32>
    %cst_14 = arith.constant dense<0xFF800000> : vector<3x16x128xf32>
    %17 = vector.multi_reduction <maximumf>, %16, %cst_14 [1] : vector<3x4x16x128xf32> to vector<3x16x128xf32>
    %18 = vector.extract_strided_slice %9 {offsets = [0, 12, 0, 0], sizes = [3, 4, 16, 128], strides = [1, 1, 1, 1]} : vector<3x16x16x128xf32> to vector<3x4x16x128xf32>
    %cst_15 = arith.constant dense<0xFF800000> : vector<3x16x128xf32>
    %19 = vector.multi_reduction <maximumf>, %18, %cst_15 [1] : vector<3x4x16x128xf32> to vector<3x16x128xf32>
    %20 = vector.shape_cast %11 : vector<3x16x128xf32> to vector<3x1x16x128xf32>
    %21 = vector.shape_cast %13 : vector<3x16x128xf32> to vector<3x1x16x128xf32>
    %22 = vector.shape_cast %15 : vector<3x16x128xf32> to vector<3x1x16x128xf32>
    %23 = vector.shape_cast %17 : vector<3x16x128xf32> to vector<3x1x16x128xf32>
    %24 = vector.shape_cast %19 : vector<3x16x128xf32> to vector<3x1x16x128xf32>
    %25 = tpu.concatenate %20, %21, %22, %23, %24 in 1 : vector<3x1x16x128xf32>, vector<3x1x16x128xf32>, vector<3x1x16x128xf32>, vector<3x1x16x128xf32>, vector<3x1x16x128xf32> -> vector<3x5x16x128xf32>
    %26 = vector.extract_strided_slice %25 {offsets = [0, 0, 0, 0], sizes = [3, 5, 3, 128], strides = [1, 1, 1, 1]} : vector<3x5x16x128xf32> to vector<3x5x3x128xf32>
    %cst_16 = arith.constant dense<0xFF800000> : vector<3x5x128xf32>
    %27 = vector.multi_reduction <maximumf>, %26, %cst_16 [2] : vector<3x5x3x128xf32> to vector<3x5x128xf32>
    %28 = vector.extract_strided_slice %25 {offsets = [0, 0, 2, 0], sizes = [3, 5, 3, 128], strides = [1, 1, 1, 1]} : vector<3x5x16x128xf32> to vector<3x5x3x128xf32>
    %cst_17 = arith.constant dense<0xFF800000> : vector<3x5x128xf32>
    %29 = vector.multi_reduction <maximumf>, %28, %cst_17 [2] : vector<3x5x3x128xf32> to vector<3x5x128xf32>
    %30 = vector.extract_strided_slice %25 {offsets = [0, 0, 4, 0], sizes = [3, 5, 3, 128], strides = [1, 1, 1, 1]} : vector<3x5x16x128xf32> to vector<3x5x3x128xf32>
    %cst_18 = arith.constant dense<0xFF800000> : vector<3x5x128xf32>
    %31 = vector.multi_reduction <maximumf>, %30, %cst_18 [2] : vector<3x5x3x128xf32> to vector<3x5x128xf32>
    %32 = vector.extract_strided_slice %25 {offsets = [0, 0, 6, 0], sizes = [3, 5, 4, 128], strides = [1, 1, 1, 1]} : vector<3x5x16x128xf32> to vector<3x5x4x128xf32>
    %cst_19 = arith.constant dense<0xFF800000> : vector<3x5x128xf32>
    %33 = vector.multi_reduction <maximumf>, %32, %cst_19 [2] : vector<3x5x4x128xf32> to vector<3x5x128xf32>
    %34 = vector.extract_strided_slice %25 {offsets = [0, 0, 9, 0], sizes = [3, 5, 3, 128], strides = [1, 1, 1, 1]} : vector<3x5x16x128xf32> to vector<3x5x3x128xf32>
    %cst_20 = arith.constant dense<0xFF800000> : vector<3x5x128xf32>
    %35 = vector.multi_reduction <maximumf>, %34, %cst_20 [2] : vector<3x5x3x128xf32> to vector<3x5x128xf32>
    %36 = vector.extract_strided_slice %25 {offsets = [0, 0, 11, 0], sizes = [3, 5, 3, 128], strides = [1, 1, 1, 1]} : vector<3x5x16x128xf32> to vector<3x5x3x128xf32>
    %cst_21 = arith.constant dense<0xFF800000> : vector<3x5x128xf32>
    %37 = vector.multi_reduction <maximumf>, %36, %cst_21 [2] : vector<3x5x3x128xf32> to vector<3x5x128xf32>
    %38 = vector.extract_strided_slice %25 {offsets = [0, 0, 13, 0], sizes = [3, 5, 3, 128], strides = [1, 1, 1, 1]} : vector<3x5x16x128xf32> to vector<3x5x3x128xf32>
    %cst_22 = arith.constant dense<0xFF800000> : vector<3x5x128xf32>
    %39 = vector.multi_reduction <maximumf>, %38, %cst_22 [2] : vector<3x5x3x128xf32> to vector<3x5x128xf32>
    %40 = vector.shape_cast %27 : vector<3x5x128xf32> to vector<3x5x1x128xf32>
    %41 = vector.shape_cast %29 : vector<3x5x128xf32> to vector<3x5x1x128xf32>
    %42 = vector.shape_cast %31 : vector<3x5x128xf32> to vector<3x5x1x128xf32>
    %43 = vector.shape_cast %33 : vector<3x5x128xf32> to vector<3x5x1x128xf32>
    %44 = vector.shape_cast %35 : vector<3x5x128xf32> to vector<3x5x1x128xf32>
    %45 = vector.shape_cast %37 : vector<3x5x128xf32> to vector<3x5x1x128xf32>
    %46 = vector.shape_cast %39 : vector<3x5x128xf32> to vector<3x5x1x128xf32>
    %47 = tpu.concatenate %40, %41, %42, %43, %44, %45, %46 in 2 : vector<3x5x1x128xf32>, vector<3x5x1x128xf32>, vector<3x5x1x128xf32>, vector<3x5x1x128xf32>, vector<3x5x1x128xf32>, vector<3x5x1x128xf32>, vector<3x5x1x128xf32> -> vector<3x5x7x128xf32>
    %cst_23 = arith.constant 0.000000e+00 : f32
    %48 = vector.broadcast %cst_23 : f32 to vector<3x5x7x128xf32>
    %49 = arith.maximumf %47, %48 : vector<3x5x7x128xf32>
    %c0_24 = arith.constant 0 : index
    %c0_25 = arith.constant 0 : index
    %c0_26 = arith.constant 0 : index
    %c0_27 = arith.constant 0 : index
    %50 = vector.load %arg2[%c0_24, %c0_25, %c0_26, %c0_27] : memref<3x5x7x128xf32, #tpu.memory_space<vmem>>, vector<3x5x7x128xf32>
    tpu.vector_store %arg2[%c0_24, %c0_25, %c0_26, %c0_27], %49 {strides = array<i32>} : memref<3x5x7x128xf32, #tpu.memory_space<vmem>>, vector<3x5x7x128xf32>,
    return
  }
  func.func @transform_0(%arg0: i32) -> (i32, i32, i32, i32) {
    %c0_i32 = arith.constant 0 : i32
    %c0_i32_0 = arith.constant 0 : i32
    %c0_i32_1 = arith.constant 0 : i32
    %c0_i32_2 = arith.constant 0 : i32
    return %c0_i32, %c0_i32_0, %c0_i32_1, %arg0 : i32, i32, i32, i32
  }
  func.func @transform_1(%arg0: i32) -> (i32, i32, i32, i32) {
    %c0_i32 = arith.constant 0 : i32
    %c0_i32_0 = arith.constant 0 : i32
    %c0_i32_1 = arith.constant 0 : i32
    %c0_i32_2 = arith.constant 0 : i32
    return %c0_i32, %c0_i32_0, %c0_i32_1, %arg0 : i32, i32, i32, i32
  }
}

</mosaic_0001>

<bundles_post_ra>
// kernel: tpu_custom_call.1
= control target key start
LH: loop header
LB: loop body
LE: loop exit
PB: predicated region body
PF: predicated region fallthrough
CT: control target
= control target key end

     0   :  { %6 = vsyncpa [#allocation3], 0  ;;  %s3395_s0 = inlined_call_operand.hbm [shape: f32[8,16,16,128], index: 0, kind: input, shape index: {}]   ;;  %s3396_s1 = inlined_call_operand.hbm [shape: f32[3,5,7,128], index: 1, kind: output, shape index: {}]  }
   0x1   :  { %7 = vsyncpa [#allocation4], 0  ;;  %s1625_s6 = smov [#allocation2]   ;;  %s1577_s10 = scalar_lea.hbm %s3395_s0, 32768 }
   0x2   :  { %s13_s7 = sshll.u32 %s1625_s6, 4  ;;  %p1578_p0 = scmp.ne.s32.totalorder %s3395_s0, %s1577_s10  ;;  %s14_s7 = int_to_ptr.vmem [resolvable:$true] %s13_s7 }
   0x3   :  { %p1581_p1 = scmp.lt.u32.totalorder %s1577_s10, %s3395_s0 }
   0x5   :  { %p1583_p2 = pnand %p1581_p1, %p1578_p0 }
   0x7   :  { %1586 = shalt.err (!%p1583_p2)
}
   0x8   :  { %s1587_s15 = scalar_lea.vmem %s14_s7, 32768  ;;  %p1592_p4 = scmp.lt.s32.totalorder %s14_s7, %s14_s7 }
   0x9   :  { %p1588_p3 = scmp.ne.s32.totalorder %s14_s7, %s1587_s15  ;;  %p1593_p5 = scmp.lt.s32.totalorder %s1587_s15, %s1587_s15 }
   0xb   :  { %p1594_p6 = por %p1593_p5, %p1592_p4 }
   0xd   :  { %p1595_p7 = pnand %p1594_p6, %p1588_p3 }
   0xf   :  { %1598 = shalt.err (!%p1595_p7)
}
  0x10   :  { %s1626_s16 = smov 128   ;;  %s1627_s17 = smov 8  }
  0x11   :  { %19 = dma.hbm_to_vmem [thread:$0]  %s3395_s0, 32768, %s14_s7, [#allocation3], %s1626_s16, %s1626_s16, %s1627_s17  }
  0x12   :  { %1621 = dma.done.wait [#allocation3], 32768  }
  0x13   :  { %1622 = vsyncadd [#allocation3], 4294934528  ;;  %v1654_v0 = vld [vmem:[#allocation2] sm:$0xff]  ;;  %v1656_v1 = vld [vmem:[#allocation2 + $0x8] sm:$0xff]  ;;  %vm659_vm0 = vcmask 1042432   ;;  %vm765_vm1 = vcmask 1044482  }
  0x14   :  { %v1658_v2 = vld [vmem:[#allocation2 + $0x10] sm:$0xff]  ;;  %v1660_v3 = vld [vmem:[#allocation2 + $0x18] sm:$0xff]  ;;  %v1662_v4 = vld [vmem:[#allocation2 + $0x20] sm:$0xff]  ;;  %vm871_vm2 = vcmask 1046532   ;;  %vm977_vm3 = vcmask 1047558   ;;  %vm979_vm4 = vcmask 1041408  }
  0x15   :  { %v1664_v5 = vld [vmem:[#allocation2 + $0x100] sm:$0xff]  ;;  %v1666_v6 = vld [vmem:[#allocation2 + $0x28] sm:$0xff]  ;;  %v1668_v7 = vld [vmem:[#allocation2 + $0x30] sm:$0xff]  ;;  %vm1114_vm5 = vcmask 1043457   ;;  %vm1220_vm6 = vcmask 1045507   ;;  %vm1326_vm7 = vcmask 1047557  }
  0x16   :  { %v1670_v8 = vld [vmem:[#allocation2 + $0x38] sm:$0xff]  ;;  %v1672_v9 = vld [vmem:[#allocation2 + $0x40] sm:$0xff]  ;;  %v1674_v10 = vld [vmem:[#allocation2 + $0x108] sm:$0xff]  ;;  %v119_v34 = vmax.f32 %v1654_v0, %v1664_v5  ;;  %vm1432_vm8 = vcmask 1040384   ;;  %vm1478_vm9 = vcmask 1043456   ;;  %vm1494_vm10 = vcmask 1044480  }
  0x17   :  { %v1676_v11 = vld [vmem:[#allocation2 + $0x110] sm:$0xff]  ;;  %v1678_v12 = vld [vmem:[#allocation2 + $0x118] sm:$0xff]  ;;  %v1680_v13 = vld [vmem:[#allocation2 + $0x48] sm:$0xff]  ;;  %v121_v42 = vmax.f32 %v1656_v1, %v1674_v10  ;;  %vm1510_vm11 = vcmask 1045504   ;;  %s1628_s0 = smov [#allocation5]  }
  0x18   :  { %v1682_v14 = vld [vmem:[#allocation2 + $0x50] sm:$0xff]  ;;  %v1684_v15 = vld [vmem:[#allocation2 + $0x58] sm:$0xff]  ;;  %v1686_v16 = vld [vmem:[#allocation2 + $0x60] sm:$0xff]  ;;  %v3456_v5 = vmax.f32 %v1660_v3, %v1678_v12  ;;  %s1561_s20 = sshll.u32 %s1628_s0, 4  ;;  %s1562_s20 = int_to_ptr.vmem [resolvable:$true] %s1561_s20 }
  0x19   :  { %v1688_v17 = vld [vmem:[#allocation2 + $0x120] sm:$0xff]  ;;  %v1690_v18 = vld [vmem:[#allocation2 + $0x128] sm:$0xff]  ;;  %v1692_v19 = vld [vmem:[#allocation2 + $0x130] sm:$0xff]  ;;  %s1599_s21 = scalar_lea.vmem %s1562_s20, 1920  ;;  %p1604_p9 = scmp.lt.s32.totalorder %s1562_s20, %s1562_s20 }
  0x1a   :  { %v1694_v20 = vld [vmem:[#allocation2 + $0x68] sm:$0xff]  ;;  %v1696_v21 = vld [vmem:[#allocation2 + $0x70] sm:$0xff]  ;;  %v1698_v22 = vld [vmem:[#allocation2 + $0x78] sm:$0xff]  ;;  %v129_v53 = vmax.f32 %v1666_v6, %v1690_v18  ;;  %v131_v54 = vmax.f32 %v1668_v7, %v1692_v19  ;;  %p1600_p8 = scmp.ne.s32.totalorder %s1562_s20, %s1599_s21  ;;  %p1605_p10 = scmp.lt.s32.totalorder %s1599_s21, %s1599_s21 }
  0x1b   :  { %v1700_v23 = vld [vmem:[#allocation2 + $0x80] sm:$0xff]  ;;  %v1702_v24 = vld [vmem:[#allocation2 + $0x138] sm:$0xff]  ;;  %v1706_v26 = vld [vmem:[#allocation2 + $0x148] sm:$0xff] }
  0x1c   :  { %v1704_v25 = vld [vmem:[#allocation2 + $0x140] sm:$0xff]  ;;  %v1708_v27 = vld [vmem:[#allocation2 + $0x88] sm:$0xff]  ;;  %v1710_v28 = vld [vmem:[#allocation2 + $0x90] sm:$0xff]  ;;  %v133_v55 = vmax.f32 %v1670_v8, %v1702_v24  ;;  %v137_v62 = vmax.f32 %v1680_v13, %v1706_v26  ;;  %p1606_p11 = por %p1605_p10, %p1604_p9 }
  0x1d   :  { %v1712_v29 = vld [vmem:[#allocation2 + $0x98] sm:$0xff]  ;;  %v1714_v30 = vld [vmem:[#allocation2 + $0xa0] sm:$0xff]  ;;  %v1716_v31 = vld [vmem:[#allocation2 + $0x150] sm:$0xff] }
  0x1e   :  { %v1718_v32 = vld [vmem:[#allocation2 + $0x158] sm:$0xff]  ;;  %v1720_v33 = vld [vmem:[#allocation2 + $0x160] sm:$0xff]  ;;  %v1724_v35 = vld [vmem:[#allocation2 + $0xa8] sm:$0xff]  ;;  %v139_v63 = vmax.f32 %v1682_v14, %v1716_v31  ;;  %p1607_p12 = pnand %p1606_p11, %p1600_p8 }
  0x1f   :  { %v1726_v36 = vld [vmem:[#allocation2 + $0xb0] sm:$0xff]  ;;  %v1728_v37 = vld [vmem:[#allocation2 + $0xb8] sm:$0xff]  ;;  %v1730_v38 = vld [vmem:[#allocation2 + $0xc0] sm:$0xff]  ;;  %v141_v1 = vmax.f32 %v1684_v15, %v1718_v32  ;;  %v143_v6 = vmax.f32 %v1686_v16, %v1720_v33 }
  0x20   :  { %v1732_v39 = vld [vmem:[#allocation2 + $0x168] sm:$0xff]  ;;  %v1734_v40 = vld [vmem:[#allocation2 + $0x170] sm:$0xff]  ;;  %v1736_v41 = vld [vmem:[#allocation2 + $0x178] sm:$0xff] }
  0x21   :  { %v1746_v46 = vld [vmem:[#allocation2 + $0xc8] sm:$0xff]  ;;  %v1748_v47 = vld [vmem:[#allocation2 + $0xd0] sm:$0xff]  ;;  %v1750_v48 = vld [vmem:[#allocation2 + $0xd8] sm:$0xff]  ;;  %v145_v13 = vmax.f32 %v1694_v20, %v1732_v39  ;;  %v147_v14 = vmax.f32 %v1696_v21, %v1734_v40  ;;  %v149_v15 = vmax.f32 %v1698_v22, %v1736_v41 }
  0x22   :  { %v1752_v49 = vld [vmem:[#allocation2 + $0xe0] sm:$0xff]  ;;  %v1756_v51 = vld [vmem:[#allocation2 + $0x188] sm:$0xff]  ;;  %v1758_v52 = vld [vmem:[#allocation2 + $0x190] sm:$0xff] }
  0x23   :  { %3451 = vst [vmem:[#allocation8_spill] sm:$0xff] %v1752_v49  ;;  %v1754_v50 = vld [vmem:[#allocation2 + $0x180] sm:$0xff]  ;;  %v1768_v57 = vld [vmem:[#allocation2 + $0xe8] sm:$0xff]  ;;  %v1770_v58 = vld [vmem:[#allocation2 + $0xf0] sm:$0xff] }
  0x24   :  { %v1772_v59 = vld [vmem:[#allocation2 + $0x198] sm:$0xff]  ;;  %v1774_v60 = vld [vmem:[#allocation2 + $0x1a0] sm:$0xff]  ;;  %v1776_v61 = vld [vmem:[#allocation2 + $0x1a8] sm:$0xff]  ;;  %v151_v16 = vmax.f32 %v1700_v23, %v1754_v50 }
  0x25   :  { %v1786_v7 = vld [vmem:[#allocation2 + $0xf8] sm:$0xff]  ;;  %v1788_v8 = vld [vmem:[#allocation2 + $0x1b0] sm:$0xff]  ;;  %v1792_v18 = vld [vmem:[#allocation2 + $0x1c0] sm:$0xff] }
  0x26   :  { %v1790_v10 = vld [vmem:[#allocation2 + $0x1b8] sm:$0xff]  ;;  %v1802_v19 = vld [vmem:[#allocation2 + $0x1c8] sm:$0xff]  ;;  %v1804_v24 = vld [vmem:[#allocation2 + $0x1d0] sm:$0xff] }
  0x27   :  { %v1806_v26 = vld [vmem:[#allocation2 + $0x1d8] sm:$0xff]  ;;  %v1816_v32 = vld [vmem:[#allocation2 + $0x1e0] sm:$0xff]  ;;  %v1818_v23 = vld [vmem:[#allocation2 + $0x1e8] sm:$0xff] }
  0x28   :  { %3452 = vst [vmem:[#allocation9_spill] sm:$0xff] %v1806_v26  ;;  %3453 = vst [vmem:[#allocation10_spill] sm:$0xff] %v1816_v32  ;;  %v1820_v33 = vld [vmem:[#allocation2 + $0x1f0] sm:$0xff]  ;;  %v1830_v21 = vld [vmem:[#allocation2 + $0x1f8] sm:$0xff]  ;;  %v3455_v26 = vmax.f32 %v1658_v2, %v1676_v11 }
  0x29   :  { %v1832_v22 = vld [vmem:[#allocation2 + $0x200] sm:$0xff]  ;;  %v88_v20 = vld [vmem:[#allocation2 + $0x208] sm:$0xff]  ;;  %v1842_v56 = vld [vmem:[#allocation2 + $0x210] sm:$0xff] }
  0x2a   :  { %3454 = vst [vmem:[#allocation11_spill] sm:$0xff] %v1832_v22  ;;  %v90_v50 = vld [vmem:[#allocation2 + $0x218] sm:$0xff]  ;;  %v1844_v45 = vld [vmem:[#allocation2 + $0x220] sm:$0xff]  ;;  %v120_v44 = vmax.f32 %v119_v34, %v1832_v22  ;;  %v1850_v31 = vmax.f32 %v121_v42, %v88_v20  ;;  %v92_v41 = vld [vmem:[#allocation2 + $0x228] sm:$0xff]  ;;  %v124_v0 = vmax.f32 %v3455_v26, %v1842_v56  ;;  %v181_v42 = vmax.f32 %v1786_v7, %v1830_v21 }
  0x2b   :  { %v315_v43 = vmax.f32 %v88_v20, %v90_v50  ;;  %v1856_v32 = vld [vmem:[#allocation2 + $0x230] sm:$0xff]  ;;  %v1858_v49 = vld [vmem:[#allocation2 + $0x238] sm:$0xff]  ;;  %v1867_v34 = vmax.f32 %v3456_v5, %v90_v50  ;;  %v1871_v40 = vld [vmem:[#allocation2 + $0x240] sm:$0xff]  ;;  %v3457_v22 = vmax.f32 %v1662_v4, %v1688_v17  ;;  %v1881_v11 = vmax.f32 %v129_v53, %v92_v41 }
  0x2c   :  { %v1873_v20 = vld [vmem:[#allocation2 + $0x248] sm:$0xff]  ;;  %v1875_v39 = vld [vmem:[#allocation2 + $0x250] sm:$0xff]  ;;  %v1884_v3 = vmax.f32 %v131_v54, %v1856_v32  ;;  %v1887_v12 = vmax.f32 %v133_v55, %v1858_v49  ;;  %v1891_v26 = vld [vmem:[#allocation2 + $0x258] sm:$0xff]  ;;  %v3458_v4 = vmax.f32 %v1672_v9, %v1704_v25  ;;  %v569_v25 = vmax.f32 %v120_v44, %v124_v0 }
  0x2d   :  { %v128_v2 = vmax.f32 %v3457_v22, %v1844_v45  ;;  %v1889_v7 = vmax.f32 %v315_v43, %v92_v41  ;;  %v1893_v21 = vld [vmem:[#allocation2 + $0x260] sm:$0xff]  ;;  %v1895_v50 = vld [vmem:[#allocation2 + $0x268] sm:$0xff]  ;;  %v1904_v53 = vmax.f32 %v137_v62, %v1873_v20  ;;  %v1907_v54 = vmax.f32 %v139_v63, %v1875_v39  ;;  %v1909_v43 = vld [vmem:[#allocation2 + $0x270] sm:$0xff] }
  0x2e   :  { %v1901_v17 = vmax.f32 %v3458_v4, %v1871_v40  ;;  %v1911_v55 = vld [vmem:[#allocation2 + $0x278] sm:$0xff]  ;;  %v1913_v22 = vld [vmem:[#allocation2 + $0x280] sm:$0xff]  ;;  %v1916_v41 = vmax.f32 %v141_v1, %v1891_v26  ;;  %v1919_v5 = vmax.f32 %v143_v6, %v1893_v21  ;;  %v1922_v9 = vmax.f32 %v145_v13, %v1895_v50  ;;  %v1924_v62 = vld [vmem:[#allocation2 + $0x288] sm:$0xff] }
  0x2f   :  { %3459 = vst [vmem:[#allocation12_spill] sm:$0xff] %v1904_v53  ;;  %3460 = vst [vmem:[#allocation13_spill] sm:$0xff] %v1907_v54  ;;  %v1926_v63 = vld [vmem:[#allocation2 + $0x290] sm:$0xff]  ;;  %v1928_v4 = vld [vmem:[#allocation2 + $0x298] sm:$0xff]  ;;  %v1931_v54 = vmax.f32 %v147_v14, %v1909_v43  ;;  %v1934_v53 = vmax.f32 %v149_v15, %v1911_v55  ;;  %v1937_v1 = vmax.f32 %v151_v16, %v1913_v22 }
  0x30   :  { %3461 = vst [vmem:[#allocation14_spill] sm:$0xff] %v1916_v41  ;;  %3462 = vst [vmem:[#allocation15_spill] sm:$0xff] %v1922_v9  ;;  %v572_v6 = vmax.f32 %v1850_v31, %v1867_v34  ;;  %v1941_v13 = vld [vmem:[#allocation2 + $0x2a0] sm:$0xff]  ;;  %v1943_v44 = vld [vmem:[#allocation2 + $0x2a8] sm:$0xff]  ;;  %v3466_v14 = vmax.f32 %v1708_v27, %v1756_v51  ;;  %v3467_v15 = vmax.f32 %v1710_v28, %v1758_v52 }
  0x31   :  { %3463 = vst [vmem:[#allocation16_spill] sm:$0xff] %v1928_v4  ;;  %3464 = vst [vmem:[#allocation17_spill] sm:$0xff] %v1934_v53  ;;  %v1945_v0 = vld [vmem:[#allocation2 + $0x2b0] sm:$0xff]  ;;  %v3468_v31 = vmax.f32 %v1712_v29, %v1772_v59  ;;  %v1967_v53 = vld [vmem:[#allocation2 + $0x2b8] sm:$0xff]  ;;  %v3471_v28 = vmax.f32 %v1714_v30, %v1774_v60  ;;  %v3473_v29 = vmax.f32 %v1724_v35, %v1776_v61 }
  0x32   :  { %3465 = vst [vmem:[#allocation18_spill] sm:$0xff] %v1937_v1  ;;  %v1951_v41 = vmax.f32 %v3466_v14, %v1924_v62  ;;  %v1957_v16 = vmax.f32 %v3467_v15, %v1926_v63  ;;  %v570_v1 = vmax.f32 %v569_v25, %v128_v2  ;;  %v1969_v27 = vld [vmem:[#allocation2 + $0x2c0] sm:$0xff]  ;;  %v1971_v51 = vld [vmem:[#allocation2 + $0x2c8] sm:$0xff]  ;;  %v3475_v2 = vmax.f32 %v1726_v36, %v1788_v8  ;;  %v113_v15 = vld [vmem:[#allocation2 + $0x2d0] sm:$0xff] }
  0x33   :  { %v1963_v34 = vmax.f32 %v3468_v31, %v1928_v4  ;;  %3469 = vst [vmem:[#allocation19_spill] sm:$0xff] %v1969_v27  ;;  %3470 = vst [vmem:[#allocation20_spill] sm:$0xff] %v1971_v51  ;;  %v1977_v52 = vmax.f32 %v3471_v28, %v1941_v13  ;;  %v1983_v59 = vmax.f32 %v3473_v29, %v1943_v44  ;;  %v114_v31 = vld [vmem:[#allocation2 + $0x2d8] sm:$0xff]  ;;  %v115_v30 = vld [vmem:[#allocation2 + $0x2e0] sm:$0xff] }
  0x34   :  { %v1989_v25 = vmax.f32 %v3475_v2, %v1945_v0  ;;  %v3477_v60 = vmax.f32 %v1728_v37, %v1790_v10  ;;  %v3479_v35 = vmax.f32 %v1730_v38, %v1792_v18  ;;  %v3481_v36 = vmax.f32 %v1746_v46, %v1802_v19  ;;  %v116_v2 = vld [vmem:[#allocation2 + $0x2e8] sm:$0xff]  ;;  %v117_v14 = vld [vmem:[#allocation2 + $0x2f0] sm:$0xff]  ;;  %v118_v9 = vld [vmem:[#allocation2 + $0x2f8] sm:$0xff] }
  0x35   :  { %3472 = vst [vmem:[#allocation21_spill] sm:$0xff] %v1977_v52  ;;  %3474 = vst [vmem:[#allocation22_spill] sm:$0xff] %v1983_v59  ;;  %v390_v29 = vmax.f32 %v113_v15, %v115_v30  ;;  %v3483_v37 = vmax.f32 %v1748_v47, %v1804_v24  ;;  %v393_v19 = vmax.f32 %v114_v31, %v116_v2  ;;  %v2163_v4 = vld [vmem:[#allocation2 + $0x3f8] sm:$0xff] }
  0x36   :  { %3476 = vst [vmem:[#allocation23_spill] sm:$0xff] %v1989_v25  ;;  %v1997_v28 = vmax.f32 %v3477_v60, %v1967_v53  ;;  %v2003_v61 = vmax.f32 %v3479_v35, %v1969_v27  ;;  %v2009_v8 = vmax.f32 %v3481_v36, %v1971_v51  ;;  %v3485_v60 = vld [vmem:[#allocation9_spill] sm:$0xff]  ;;  %v3488_v35 = vld [vmem:[#allocation8_spill] sm:$0xff]  ;;  %v3492_v36 = vmax.f32 %v1768_v57, %v1818_v23  ;;  %v2047_v23 = vld [vmem:[#allocation2 + $0x328] sm:$0xff] }
  0x37   :  { %v2014_v10 = vmax.f32 %v3483_v37, %v113_v15  ;;  %v3486_v38 = vmax.f32 %v1750_v48, %v3485_v60  ;;  %v3494_v47 = vmax.f32 %v1770_v58, %v1820_v33  ;;  %v2036_v15 = vmax.f32 %v181_v42, %v118_v9  ;;  %v2038_v48 = vld [vmem:[#allocation2 + $0x300] sm:$0xff]  ;;  %v217_v37 = vld [vmem:[#allocation2 + $0x308] sm:$0xff]  ;;  %v2040_v60 = vld [vmem:[#allocation2 + $0x310] sm:$0xff] }
  0x38   :  { %3478 = vst [vmem:[#allocation24_spill] sm:$0xff] %v1997_v28  ;;  %3480 = vst [vmem:[#allocation25_spill] sm:$0xff] %v2003_v61  ;;  %v3489_v28 = vld [vmem:[#allocation10_spill] sm:$0xff]  ;;  %v2045_v57 = vld [vmem:[#allocation2 + $0x320] sm:$0xff] }
  0x39   :  { %3482 = vst [vmem:[#allocation26_spill] sm:$0xff] %v2009_v8  ;;  %3484 = vst [vmem:[#allocation27_spill] sm:$0xff] %v2014_v10  ;;  %v2019_v18 = vmax.f32 %v3486_v38, %v114_v31  ;;  %v3490_v25 = vmax.f32 %v3488_v35, %v3489_v28  ;;  %v2029_v8 = vmax.f32 %v3492_v36, %v116_v2  ;;  %v3497_v58 = vld [vmem:[#allocation11_spill] sm:$0xff]  ;;  %v2057_v38 = vld [vmem:[#allocation2 + $0x338] sm:$0xff] }
  0x3a   :  { %v2034_v24 = vmax.f32 %v3494_v47, %v117_v14  ;;  %3496 = vst [vmem:[#allocation29_spill] sm:$0xff] %v2036_v15  ;;  %v317_v31 = vmax.f32 %v1889_v7, %v217_v37  ;;  %v2053_v28 = vmax.f32 %v393_v19, %v118_v9  ;;  %v2055_v2 = vld [vmem:[#allocation2 + $0x330] sm:$0xff]  ;;  %v573_v35 = vmax.f32 %v572_v6, %v1881_v11  ;;  %v2069_v47 = vld [vmem:[#allocation2 + $0x348] sm:$0xff]  ;;  %v2073_v19 = vld [vmem:[#allocation2 + $0x358] sm:$0xff] }
  0x3b   :  { %3487 = vst [vmem:[#allocation9_spill] sm:$0xff] %v2019_v18  ;;  %v2024_v46 = vmax.f32 %v3490_v25, %v115_v30  ;;  %3493 = vst [vmem:[#allocation10_spill] sm:$0xff] %v2029_v8  ;;  %v2042_v25 = vmax.f32 %v390_v29, %v117_v14  ;;  %v219_v30 = vld [vmem:[#allocation2 + $0x318] sm:$0xff]  ;;  %v2059_v14 = vld [vmem:[#allocation2 + $0x340] sm:$0xff]  ;;  %v2064_v29 = vmax.f32 %v570_v1, %v1884_v3 }
  0x3c   :  { %3495 = vst [vmem:[#allocation28_spill] sm:$0xff] %v2034_v24  ;;  %v2067_v36 = vmax.f32 %v317_v31, %v219_v30  ;;  %v2071_v9 = vld [vmem:[#allocation2 + $0x350] sm:$0xff]  ;;  %v2081_v7 = vld [vmem:[#allocation2 + $0x360] sm:$0xff]  ;;  %v2083_v11 = vld [vmem:[#allocation2 + $0x368] sm:$0xff]  ;;  %v2094_v42 = vmax.f32 %v573_v35, %v1887_v12  ;;  %v587_v30 = vmax.f32 %v1884_v3, %v1901_v17  ;;  %v3501_v37 = vmax.f32 %v1941_v13, %v1945_v0 }
  0x3d   :  { %3491 = vst [vmem:[#allocation8_spill] sm:$0xff] %v2024_v46  ;;  %3498 = vst [vmem:[#allocation11_spill] sm:$0xff] %v2064_v29  ;;  %v2085_v6 = vld [vmem:[#allocation2 + $0x370] sm:$0xff]  ;;  %v2098_v33 = vld [vmem:[#allocation2 + $0x378] sm:$0xff]  ;;  %v3505_v3 = vmax.f32 %v1943_v44, %v1967_v53 }
  0x3e   :  { %3499 = vst [vmem:[#allocation30_spill] sm:$0xff] %v2094_v42  ;;  %v322_v1 = vmax.f32 %v2067_v36, %v2047_v23  ;;  %v2100_v29 = vld [vmem:[#allocation2 + $0x380] sm:$0xff]  ;;  %v2102_v15 = vld [vmem:[#allocation2 + $0x388] sm:$0xff]  ;;  %v2110_v35 = vld [vmem:[#allocation2 + $0x390] sm:$0xff]  ;;  %v605_v36 = vmax.f32 %v1919_v5, %v1931_v54 }
  0x3f   :  { %v2112_v42 = vld [vmem:[#allocation2 + $0x398] sm:$0xff]  ;;  %v236_v23 = vld [vmem:[#allocation2 + $0x3a0] sm:$0xff]  ;;  %v237_v46 = vld [vmem:[#allocation2 + $0x3a8] sm:$0xff] }
  0x40   :  { %3500 = vst [vmem:[#allocation31_spill] sm:$0xff] %v2112_v42  ;;  %v2125_v24 = vmax.f32 %v3501_v37, %v236_v23  ;;  %v2127_v18 = vld [vmem:[#allocation2 + $0x3b0] sm:$0xff]  ;;  %v2129_v61 = vld [vmem:[#allocation2 + $0x3b8] sm:$0xff]  ;;  %v2140_v17 = vmax.f32 %v3505_v3, %v237_v46  ;;  %v2142_v13 = vld [vmem:[#allocation2 + $0x3c0] sm:$0xff] }
  0x41   :  { %3503 = vst [vmem:[#allocation33_spill] sm:$0xff] %v2127_v18  ;;  %v3504_v31 = vld [vmem:[#allocation12_spill] sm:$0xff]  ;;  %v2144_v0 = vld [vmem:[#allocation2 + $0x3c8] sm:$0xff]  ;;  %v242_v37 = vld [vmem:[#allocation2 + $0x3d0] sm:$0xff] }
  0x42   :  { %3502 = vst [vmem:[#allocation32_spill] sm:$0xff] %v2125_v24  ;;  %v590_v10 = vmax.f32 %v1887_v12, %v3504_v31  ;;  %3506 = vst [vmem:[#allocation12_spill] sm:$0xff] %v2142_v13  ;;  %v3508_v23 = vld [vmem:[#allocation13_spill] sm:$0xff]  ;;  %v3510_v8 = vld [vmem:[#allocation15_spill] sm:$0xff]  ;;  %v392_v53 = vmax.f32 %v2042_v25, %v242_v37  ;;  %v377_v54 = vmax.f32 %v2140_v17, %v2129_v61 }
  0x43   :  { %3507 = vst [vmem:[#allocation34_spill] sm:$0xff] %v2144_v0  ;;  %v588_v59 = vmax.f32 %v587_v30, %v3508_v23  ;;  %v3509_v52 = vld [vmem:[#allocation17_spill] sm:$0xff]  ;;  %v243_v44 = vld [vmem:[#allocation2 + $0x3d8] sm:$0xff]  ;;  %v245_v31 = vld [vmem:[#allocation2 + $0x3e8] sm:$0xff]  ;;  %v3513_v61 = vmax.f32 %v3497_v58, %v2038_v48 }
  0x44   :  { %v608_v42 = vmax.f32 %v3510_v8, %v3509_v52  ;;  %v244_v46 = vld [vmem:[#allocation2 + $0x3e0] sm:$0xff]  ;;  %v395_v23 = vmax.f32 %v2053_v28, %v243_v44  ;;  %v2161_v52 = vld [vmem:[#allocation2 + $0x3f0] sm:$0xff]  ;;  %v3512_v37 = vld [vmem:[#allocation14_spill] sm:$0xff] }
  0x45   :  { %v248_v12 = vld [vmem:[#allocation2 + $0x400] sm:$0xff]  ;;  %v2166_v25 = vmax.f32 %v588_v59, %v1919_v5  ;;  %v591_v18 = vmax.f32 %v590_v10, %v3512_v37  ;;  %v2169_v24 = vmax.f32 %v392_v53, %v244_v46  ;;  %v249_v3 = vld [vmem:[#allocation2 + $0x408] sm:$0xff]  ;;  %v250_v13 = vld [vmem:[#allocation2 + $0x410] sm:$0xff]  ;;  %v3515_v10 = vmax.f32 %v1842_v56, %v2040_v60 }
  0x46   :  { %v251_v30 = vld [vmem:[#allocation2 + $0x418] sm:$0xff]  ;;  %v2174_v17 = vmax.f32 %v3513_v61, %v248_v12  ;;  %v3514_v28 = vld [vmem:[#allocation18_spill] sm:$0xff]  ;;  %v609_v0 = vmax.f32 %v608_v42, %v1951_v41  ;;  %v399_v51 = vmax.f32 %v395_v23, %v245_v31  ;;  %v323_v27 = vmax.f32 %v322_v1, %v249_v3  ;;  %v252_v5 = vld [vmem:[#allocation2 + $0x420] sm:$0xff] }
  0x47   :  { %3511 = vst [vmem:[#allocation13_spill] sm:$0xff] %v2166_v25  ;;  %v606_v44 = vmax.f32 %v605_v36, %v3514_v28  ;;  %v253_v59 = vld [vmem:[#allocation2 + $0x428] sm:$0xff]  ;;  %v254_v25 = vld [vmem:[#allocation2 + $0x430] sm:$0xff]  ;;  %v2181_v53 = vmax.f32 %v3515_v10, %v250_v13  ;;  %v2184_v46 = vmax.f32 %v591_v18, %v3510_v8  ;;  %v397_v48 = vmax.f32 %v2169_v24, %v2161_v52  ;;  %v255_v58 = vld [vmem:[#allocation2 + $0x438] sm:$0xff] }
  0x48   :  { %v256_v36 = vld [vmem:[#allocation2 + $0x440] sm:$0xff]  ;;  %v257_v12 = vld [vmem:[#allocation2 + $0x448] sm:$0xff]  ;;  %v3517_v41 = vmax.f32 %v1844_v45, %v2045_v57  ;;  %v3518_v1 = vmax.f32 %v1856_v32, %v2055_v2  ;;  %v400_v8 = vmax.f32 %v399_v51, %v2163_v4  ;;  %v327_v18 = vmax.f32 %v251_v30, %v323_v27  ;;  %v258_v24 = vld [vmem:[#allocation2 + $0x450] sm:$0xff] }
  0x49   :  { %3516 = vst [vmem:[#allocation17_spill] sm:$0xff] %v2184_v46  ;;  %v2199_v60 = vmax.f32 %v606_v44, %v1957_v16  ;;  %v259_v13 = vld [vmem:[#allocation2 + $0x458] sm:$0xff]  ;;  %v260_v31 = vld [vmem:[#allocation2 + $0x460] sm:$0xff]  ;;  %v3520_v3 = vmax.f32 %v1858_v49, %v2057_v38  ;;  %v3521_v57 = vmax.f32 %v1871_v40, %v2059_v14  ;;  %v261_v2 = vld [vmem:[#allocation2 + $0x468] sm:$0xff]  ;;  %v3522_v4 = vmax.f32 %v1873_v20, %v2069_v47 }
  0x4a   :  { %v2191_v42 = vmax.f32 %v3517_v41, %v252_v5  ;;  %v2196_v56 = vmax.f32 %v3518_v1, %v254_v25  ;;  %v262_v23 = vld [vmem:[#allocation2 + $0x470] sm:$0xff]  ;;  %v263_v52 = vld [vmem:[#allocation2 + $0x478] sm:$0xff]  ;;  %v3523_v51 = vmax.f32 %v1875_v39, %v2071_v9  ;;  %v3524_v49 = vmax.f32 %v1891_v26, %v2073_v19  ;;  %v264_v37 = vld [vmem:[#allocation2 + $0x480] sm:$0xff] }
  0x4b   :  { %3519 = vst [vmem:[#allocation15_spill] sm:$0xff] %v2199_v60  ;;  %v2205_v45 = vmax.f32 %v3520_v3, %v255_v58  ;;  %v2210_v32 = vmax.f32 %v3521_v57, %v256_v36  ;;  %v2215_v27 = vmax.f32 %v3522_v4, %v257_v12  ;;  %v3525_v40 = vmax.f32 %v1893_v21, %v2081_v7  ;;  %v265_v20 = vld [vmem:[#allocation2 + $0x488] sm:$0xff]  ;;  %v266_v47 = vld [vmem:[#allocation2 + $0x490] sm:$0xff]  ;;  %v267_v7 = vld [vmem:[#allocation2 + $0x498] sm:$0xff] }
  0x4c   :  { %v2220_v30 = vmax.f32 %v3523_v51, %v258_v24  ;;  %v2225_v38 = vmax.f32 %v3524_v49, %v259_v13  ;;  %v328_v25 = vmax.f32 %v327_v18, %v253_v59  ;;  %v3526_v61 = vmax.f32 %v1895_v50, %v2083_v11  ;;  %v268_v28 = vld [vmem:[#allocation2 + $0x4a0] sm:$0xff]  ;;  %v269_v44 = vld [vmem:[#allocation2 + $0x4a8] sm:$0xff]  ;;  %v3538_v12 = vld [vmem:[#allocation16_spill] sm:$0xff] }
  0x4d   :  { %v2230_v14 = vmax.f32 %v3525_v40, %v260_v31  ;;  %v3527_v9 = vmax.f32 %v1909_v43, %v2085_v6  ;;  %v3528_v19 = vmax.f32 %v1911_v55, %v2098_v33  ;;  %v3530_v5 = vmax.f32 %v1913_v22, %v2100_v29  ;;  %v3535_v33 = vld [vmem:[#allocation32_spill] sm:$0xff]  ;;  %v3536_v10 = vld [vmem:[#allocation33_spill] sm:$0xff]  ;;  %v2272_v29 = vld [vmem:[#allocation2 + $0x4b0] sm:$0xff] }
  0x4e   :  { %v2235_v39 = vmax.f32 %v3526_v61, %v261_v2  ;;  %v3531_v50 = vmax.f32 %v1924_v62, %v2102_v15  ;;  %v3533_v43 = vmax.f32 %v1926_v63, %v2110_v35  ;;  %v2263_v55 = vmax.f32 %v609_v0, %v1963_v34  ;;  %v2274_v62 = vld [vmem:[#allocation2 + $0x4b8] sm:$0xff]  ;;  %v272_v15 = vld [vmem:[#allocation2 + $0x4c0] sm:$0xff]  ;;  %v3539_v41 = vld [vmem:[#allocation31_spill] sm:$0xff] }
  0x4f   :  { %v2240_v26 = vmax.f32 %v3527_v9, %v262_v23  ;;  %v2245_v21 = vmax.f32 %v3528_v19, %v263_v52  ;;  %v2250_v59 = vmax.f32 %v3530_v5, %v264_v37  ;;  %v3537_v58 = vmax.f32 %v3535_v33, %v3536_v10  ;;  %v3541_v1 = vld [vmem:[#allocation21_spill] sm:$0xff]  ;;  %v273_v18 = vld [vmem:[#allocation2 + $0x4c8] sm:$0xff]  ;;  %v274_v24 = vld [vmem:[#allocation2 + $0x4d0] sm:$0xff] }
  0x50   :  { %v2255_v11 = vmax.f32 %v3531_v50, %v265_v20  ;;  %v2260_v6 = vmax.f32 %v3533_v43, %v266_v47  ;;  %3534 = vst [vmem:[#allocation35_spill] sm:$0xff] %v2263_v55  ;;  %v2270_v22 = vmax.f32 %v269_v44, %v377_v54  ;;  %v3540_v63 = vmax.f32 %v3538_v12, %v3539_v41  ;;  %v275_v13 = vld [vmem:[#allocation2 + $0x4d8] sm:$0xff]  ;;  %v3542_v31 = vld [vmem:[#allocation19_spill] sm:$0xff]  ;;  %v3545_v2 = vld [vmem:[#allocation22_spill] sm:$0xff] }
  0x51   :  { %3529 = vst [vmem:[#allocation14_spill] sm:$0xff] %v2245_v21  ;;  %v2268_v36 = vmax.f32 %v268_v28, %v3537_v58  ;;  %v623_v0 = vmax.f32 %v1957_v16, %v3541_v1  ;;  %v3543_v3 = vld [vmem:[#allocation12_spill] sm:$0xff]  ;;  %v626_v23 = vmax.f32 %v1963_v34, %v3545_v2  ;;  %v3546_v52 = vld [vmem:[#allocation27_spill] sm:$0xff]  ;;  %v3547_v4 = vld [vmem:[#allocation25_spill] sm:$0xff]  ;;  %v398_v47 = vmax.f32 %v397_v48, %v274_v24 }
  0x52   :  { %3532 = vst [vmem:[#allocation18_spill] sm:$0xff] %v2255_v11  ;;  %v2279_v35 = vmax.f32 %v3540_v63, %v267_v7  ;;  %v3544_v54 = vmax.f32 %v3542_v31, %v3543_v3  ;;  %v641_v51 = vmax.f32 %v3547_v4, %v3546_v52  ;;  %v3549_v40 = vld [vmem:[#allocation26_spill] sm:$0xff]  ;;  %v382_v20 = vmax.f32 %v2270_v22, %v2274_v62  ;;  %v276_v9 = vld [vmem:[#allocation2 + $0x4e0] sm:$0xff]  ;;  %v278_v7 = vld [vmem:[#allocation2 + $0x4f0] sm:$0xff] }
  0x53   :  { %v379_v16 = vmax.f32 %v2268_v36, %v2272_v29  ;;  %v401_v61 = vmax.f32 %v400_v8, %v275_v13  ;;  %v277_v19 = vld [vmem:[#allocation2 + $0x4e8] sm:$0xff]  ;;  %v279_v28 = vld [vmem:[#allocation2 + $0x4f8] sm:$0xff]  ;;  %v2298_v44 = vld [vmem:[#allocation2 + $0x500] sm:$0xff]  ;;  %v402_v8 = vmax.f32 %v276_v9, %v398_v47 }
  0x54   :  { %v2286_v57 = vmax.f32 %v3544_v54, %v272_v15  ;;  %v2300_v34 = vld [vmem:[#allocation2 + $0x508] sm:$0xff]  ;;  %v3550_v5 = vld [vmem:[#allocation20_spill] sm:$0xff]  ;;  %v3553_v10 = vld [vmem:[#allocation23_spill] sm:$0xff]  ;;  %v314_v1 = vmax.f32 %v2174_v17, %v2298_v44 }
  0x55   :  { %v3551_v50 = vld [vmem:[#allocation34_spill] sm:$0xff]  ;;  %v624_v58 = vmax.f32 %v623_v0, %v3553_v10  ;;  %v3554_v36 = vld [vmem:[#allocation24_spill] sm:$0xff]  ;;  %v405_v62 = vmax.f32 %v277_v19, %v401_v61  ;;  %v329_v15 = vmax.f32 %v328_v25, %v2300_v34  ;;  %v2313_v12 = vld [vmem:[#allocation2 + $0x510] sm:$0xff]  ;;  %v2337_v54 = vmax.f32 %v402_v8, %v278_v7 }
  0x56   :  { %v3552_v43 = vmax.f32 %v3550_v5, %v3551_v50  ;;  %v627_v29 = vmax.f32 %v626_v23, %v3554_v36  ;;  %v3555_v22 = vld [vmem:[#allocation8_spill] sm:$0xff]  ;;  %v2317_v63 = vld [vmem:[#allocation2 + $0x520] sm:$0xff]  ;;  %v2323_v0 = vld [vmem:[#allocation2 + $0x530] sm:$0xff]  ;;  %v320_v13 = vmax.f32 %v2181_v53, %v2313_v12 }
  0x57   :  { %v2310_v48 = vmax.f32 %v641_v51, %v3555_v22  ;;  %v2315_v41 = vld [vmem:[#allocation2 + $0x518] sm:$0xff]  ;;  %v326_v25 = vmax.f32 %v2191_v42, %v2317_v63  ;;  %v2332_v31 = vmax.f32 %v624_v58, %v3547_v4  ;;  %v2339_v17 = vmax.f32 %v405_v62, %v279_v28  ;;  %v2342_v23 = vld [vmem:[#allocation2 + $0x540] sm:$0xff]  ;;  %v2344_v52 = vld [vmem:[#allocation2 + $0x548] sm:$0xff] }
  0x58   :  { %v2305_v33 = vmax.f32 %v3552_v43, %v273_v18  ;;  %v2321_v18 = vld [vmem:[#allocation2 + $0x528] sm:$0xff]  ;;  %v2325_v24 = vld [vmem:[#allocation2 + $0x538] sm:$0xff]  ;;  %v2335_v3 = vmax.f32 %v627_v29, %v3549_v40  ;;  %v578_v2 = vmax.f32 %v2315_v41, %v329_v15  ;;  %v2346_v53 = vld [vmem:[#allocation2 + $0x550] sm:$0xff]  ;;  %v332_v42 = vmax.f32 %v2196_v56, %v2323_v0 }
  0x59   :  { %3556 = vst [vmem:[#allocation32_spill] sm:$0xff] %v2310_v48  ;;  %3557 = vst [vmem:[#allocation33_spill] sm:$0xff] %v2332_v31  ;;  %v2350_v4 = vld [vmem:[#allocation2 + $0x558] sm:$0xff]  ;;  %v2352_v51 = vld [vmem:[#allocation2 + $0x560] sm:$0xff]  ;;  %v335_v61 = vmax.f32 %v2205_v45, %v2325_v24  ;;  %v338_v9 = vmax.f32 %v2210_v32, %v2342_v23  ;;  %v341_v19 = vmax.f32 %v2215_v27, %v2344_v52 }
  0x5a   :  { %3558 = vst [vmem:[#allocation16_spill] sm:$0xff] %v2335_v3  ;;  %v2354_v47 = vld [vmem:[#allocation2 + $0x568] sm:$0xff]  ;;  %v344_v7 = vmax.f32 %v2220_v30, %v2346_v53  ;;  %v579_v56 = vmax.f32 %v578_v2, %v2321_v18  ;;  %v2365_v28 = vld [vmem:[#allocation2 + $0x570] sm:$0xff]  ;;  %v2367_v5 = vld [vmem:[#allocation2 + $0x578] sm:$0xff]  ;;  %v347_v45 = vmax.f32 %v2225_v38, %v2350_v4  ;;  %v2375_v32 = vmax.f32 %v2230_v14, %v2352_v51 }
  0x5b   :  { %v2369_v50 = vld [vmem:[#allocation2 + $0x580] sm:$0xff]  ;;  %v2379_v27 = vmax.f32 %v2235_v39, %v2354_v47  ;;  %v2381_v30 = vld [vmem:[#allocation2 + $0x588] sm:$0xff]  ;;  %v2383_v43 = vld [vmem:[#allocation2 + $0x590] sm:$0xff]  ;;  %v356_v58 = vmax.f32 %v2240_v26, %v2365_v28  ;;  %v575_v36 = vmax.f32 %v314_v1, %v320_v13  ;;  %v593_v37 = vmax.f32 %v332_v42, %v338_v9 }
  0x5c   :  { %3559 = vst [vmem:[#allocation31_spill] sm:$0xff] %v2381_v30  ;;  %v2385_v10 = vld [vmem:[#allocation2 + $0x598] sm:$0xff]  ;;  %v362_v14 = vmax.f32 %v2250_v59, %v2369_v50  ;;  %v2393_v29 = vld [vmem:[#allocation2 + $0x5a0] sm:$0xff]  ;;  %v2395_v39 = vld [vmem:[#allocation2 + $0x5a8] sm:$0xff]  ;;  %v2397_v22 = vmax.f32 %v579_v56, %v335_v61  ;;  %v2403_v62 = vmax.f32 %v2260_v6, %v2383_v43 }
  0x5d   :  { %3560 = vst [vmem:[#allocation21_spill] sm:$0xff] %v2395_v39  ;;  %v2407_v26 = vmax.f32 %v2279_v35, %v2385_v10  ;;  %v380_v59 = vmax.f32 %v379_v16, %v2393_v29  ;;  %v383_v15 = vmax.f32 %v382_v20, %v2395_v39  ;;  %v2411_v1 = vld [vmem:[#allocation2 + $0x5b0] sm:$0xff]  ;;  %v2413_v13 = vld [vmem:[#allocation2 + $0x5c0] sm:$0xff]  ;;  %v2415_v2 = vld [vmem:[#allocation2 + $0x5c8] sm:$0xff]  ;;  %v576_v56 = vmax.f32 %v575_v36, %v326_v25 }
  0x5e   :  { %3561 = vst [vmem:[#allocation19_spill] sm:$0xff] %v2397_v22  ;;  %3562 = vst [vmem:[#allocation12_spill] sm:$0xff] %v2403_v62  ;;  %v2417_v8 = vld [vmem:[#allocation2 + $0x5b8] sm:$0xff]  ;;  %v2419_v6 = vld [vmem:[#allocation2 + $0x5d0] sm:$0xff]  ;;  %v386_v35 = vmax.f32 %v2286_v57, %v2413_v13  ;;  %v389_v16 = vmax.f32 %v2305_v33, %v2415_v2  ;;  %v596_v20 = vmax.f32 %v335_v61, %v341_v19 }
  0x5f   :  { %3563 = vst [vmem:[#allocation22_spill] sm:$0xff] %v2407_v26  ;;  %3564 = vst [vmem:[#allocation27_spill] sm:$0xff] %v2413_v13  ;;  %v2421_v38 = vld [vmem:[#allocation2 + $0x5d8] sm:$0xff]  ;;  %v611_v22 = vmax.f32 %v2375_v32, %v356_v58  ;;  %v629_v3 = vmax.f32 %v2411_v1, %v380_v59  ;;  %v632_v25 = vmax.f32 %v2417_v8, %v383_v15  ;;  %v2434_v55 = vld [vmem:[#allocation2 + $0x5e0] sm:$0xff] }
  0x60   :  { %3565 = vst [vmem:[#allocation25_spill] sm:$0xff] %v2415_v2  ;;  %v404_v9 = vmax.f32 %v2337_v54, %v2419_v6  ;;  %v407_v36 = vmax.f32 %v2339_v17, %v2421_v38  ;;  %v2436_v46 = vld [vmem:[#allocation2 + $0x5e8] sm:$0xff]  ;;  %v2438_v57 = vld [vmem:[#allocation2 + $0x5f0] sm:$0xff]  ;;  %v2440_v33 = vld [vmem:[#allocation2 + $0x5f8] sm:$0xff]  ;;  %v2448_v59 = vmax.f32 %v576_v56, %v332_v42  ;;  %v2450_v54 = vmax.f32 %v593_v37, %v344_v7 }
  0x61   :  { %3566 = vst [vmem:[#allocation20_spill] sm:$0xff] %v2436_v46  ;;  %v2442_v61 = vld [vmem:[#allocation2 + $0x600] sm:$0xff]  ;;  %v2444_v19 = vld [vmem:[#allocation2 + $0x608] sm:$0xff]  ;;  %v2446_v58 = vld [vmem:[#allocation2 + $0x610] sm:$0xff]  ;;  %v2452_v15 = vmax.f32 %v596_v20, %v347_v45  ;;  %v2454_v17 = vmax.f32 %v611_v22, %v362_v14  ;;  %v630_v49 = vmax.f32 %v629_v3, %v2403_v62  ;;  %v633_v40 = vmax.f32 %v632_v25, %v2407_v26 }
  0x62   :  { %3567 = vst [vmem:[#allocation34_spill] sm:$0xff] %v2448_v59  ;;  %v647_v31 = vmax.f32 %v2434_v55, %v404_v9  ;;  %v650_v60 = vmax.f32 %v2436_v46, %v407_v36  ;;  %v2460_v48 = vld [vmem:[#allocation2 + $0x618] sm:$0xff]  ;;  %v2462_v11 = vld [vmem:[#allocation2 + $0x620] sm:$0xff]  ;;  %v2464_v42 = vld [vmem:[#allocation2 + $0x628] sm:$0xff]  ;;  %v2597_v30 = vmax.f32 %v2450_v54, %v2375_v32 }
  0x63   :  { %3568 = vst [vmem:[#allocation23_spill] sm:$0xff] %v2454_v17  ;;  %v2466_v37 = vld [vmem:[#allocation2 + $0x630] sm:$0xff]  ;;  %v2468_v7 = vld [vmem:[#allocation2 + $0x638] sm:$0xff]  ;;  %v2470_v45 = vld [vmem:[#allocation2 + $0x640] sm:$0xff]  ;;  %v2482_v9 = vmax.f32 %v630_v49, %v386_v35  ;;  %v2484_v36 = vmax.f32 %v633_v40, %v389_v16  ;;  %v2610_v39 = vmax.f32 %v2452_v15, %v2379_v27 }
  0x64   :  { %3569 = vst [vmem:[#allocation24_spill] sm:$0xff] %v2466_v37  ;;  %v648_v20 = vmax.f32 %v647_v31, %v2438_v57  ;;  %v651_v25 = vmax.f32 %v650_v60, %v2440_v33  ;;  %v2486_v59 = vld [vmem:[#allocation2 + $0x648] sm:$0xff]  ;;  %v2488_v14 = vld [vmem:[#allocation2 + $0x650] sm:$0xff]  ;;  %v2490_v26 = vld [vmem:[#allocation2 + $0x658] sm:$0xff]  ;;  %v521_v31 = vmax.f32 %v2342_v23, %v2470_v45 }
  0x65   :  { %3570 = vst [vmem:[#allocation8_spill] sm:$0xff] %v2482_v9  ;;  %3571 = vst [vmem:[#allocation36_spill] sm:$0xff] %v2484_v36  ;;  %v2492_v3 = vld [vmem:[#allocation2 + $0x660] sm:$0xff]  ;;  %v2494_v22 = vld [vmem:[#allocation2 + $0x668] sm:$0xff]  ;;  %v523_v60 = vmax.f32 %v2344_v52, %v2486_v59 }
  0x66   :  { %3572 = vst [vmem:[#allocation37_spill] sm:$0xff] %v2494_v22  ;;  %v2496_v21 = vld [vmem:[#allocation2 + $0x670] sm:$0xff]  ;;  %v2506_v56 = vmax.f32 %v648_v20, %v386_v35  ;;  %v2508_v36 = vmax.f32 %v651_v25, %v389_v16  ;;  %v2510_v9 = vld [vmem:[#allocation2 + $0x678] sm:$0xff]  ;;  %v2512_v17 = vld [vmem:[#allocation2 + $0x680] sm:$0xff] }
  0x67   :  { %3575 = vst [vmem:[#allocation40_spill] sm:$0xff] %v2512_v17  ;;  %v2514_v62 = vld [vmem:[#allocation2 + $0x688] sm:$0xff]  ;;  %v2520_v49 = vld [vmem:[#allocation2 + $0x690] sm:$0xff]  ;;  %v2522_v37 = vld [vmem:[#allocation2 + $0x698] sm:$0xff] }
  0x68   :  { %3573 = vst [vmem:[#allocation38_spill] sm:$0xff] %v2506_v56  ;;  %3574 = vst [vmem:[#allocation39_spill] sm:$0xff] %v2508_v36  ;;  %v2524_v35 = vld [vmem:[#allocation2 + $0x6a0] sm:$0xff]  ;;  %v2534_v45 = vld [vmem:[#allocation2 + $0x6a8] sm:$0xff] }
  0x69   :  { %3576 = vst [vmem:[#allocation41_spill] sm:$0xff] %v2514_v62  ;;  %3577 = vst [vmem:[#allocation42_spill] sm:$0xff] %v2524_v35  ;;  %v2536_v52 = vld [vmem:[#allocation2 + $0x6b0] sm:$0xff]  ;;  %v2538_v59 = vld [vmem:[#allocation2 + $0x6b8] sm:$0xff] }
  0x6a   :  { %3578 = vst [vmem:[#allocation43_spill] sm:$0xff] %v2534_v45  ;;  %3579 = vst [vmem:[#allocation44_spill] sm:$0xff] %v2538_v59  ;;  %v2548_v36 = vld [vmem:[#allocation2 + $0x6c0] sm:$0xff]  ;;  %v2550_v23 = vld [vmem:[#allocation2 + $0x6c8] sm:$0xff] }
  0x6b   :  { %3580 = vst [vmem:[#allocation45_spill] sm:$0xff] %v2548_v36  ;;  %3581 = vst [vmem:[#allocation46_spill] sm:$0xff] %v2550_v23  ;;  %v2552_v56 = vld [vmem:[#allocation2 + $0x6d0] sm:$0xff]  ;;  %v2562_v17 = vld [vmem:[#allocation2 + $0x6d8] sm:$0xff]  ;;  %v3584_v23 = vmax.f32 %v2298_v44, %v2442_v61  ;;  %v3587_v44 = vmax.f32 %v2313_v12, %v2446_v58 }
  0x6c   :  { %v2564_v25 = vld [vmem:[#allocation2 + $0x6e0] sm:$0xff]  ;;  %v2566_v62 = vld [vmem:[#allocation2 + $0x6e8] sm:$0xff]  ;;  %v2576_v35 = vld [vmem:[#allocation2 + $0x6f0] sm:$0xff]  ;;  %3585 = vst [vmem:[#allocation49_spill] sm:$0xff] %v2597_v30  ;;  %v3589_v30 = vmax.f32 %v2317_v63, %v2462_v11 }
  0x6d   :  { %3582 = vst [vmem:[#allocation47_spill] sm:$0xff] %v2564_v25  ;;  %3583 = vst [vmem:[#allocation48_spill] sm:$0xff] %v2566_v62  ;;  %v2578_v20 = vld [vmem:[#allocation2 + $0x6f8] sm:$0xff]  ;;  %v473_v45 = vld [vmem:[#allocation2 + $0x700] sm:$0xff]  ;;  %v3586_v62 = vmax.f32 %v2300_v34, %v2444_v19 }
  0x6e   :  { %v474_v36 = vld [vmem:[#allocation2 + $0x708] sm:$0xff]  ;;  %v475_v13 = vld [vmem:[#allocation2 + $0x710] sm:$0xff]  ;;  %v476_v16 = vld [vmem:[#allocation2 + $0x718] sm:$0xff]  ;;  %v506_v2 = vmax.f32 %v3584_v23, %v473_v45  ;;  %v3588_v23 = vmax.f32 %v2315_v41, %v2460_v48 }
  0x6f   :  { %v477_v22 = vld [vmem:[#allocation2 + $0x720] sm:$0xff]  ;;  %v478_v25 = vld [vmem:[#allocation2 + $0x728] sm:$0xff]  ;;  %v479_v40 = vld [vmem:[#allocation2 + $0x730] sm:$0xff]  ;;  %v508_v46 = vmax.f32 %v3586_v62, %v474_v36  ;;  %v510_v61 = vmax.f32 %v3587_v44, %v475_v13  ;;  %v3590_v62 = vmax.f32 %v2321_v18, %v2464_v42 }
  0x70   :  { %v512_v45 = vmax.f32 %v3588_v23, %v476_v16  ;;  %v480_v32 = vld [vmem:[#allocation2 + $0x738] sm:$0xff]  ;;  %v481_v54 = vld [vmem:[#allocation2 + $0x740] sm:$0xff]  ;;  %v482_v59 = vld [vmem:[#allocation2 + $0x748] sm:$0xff]  ;;  %v514_v34 = vmax.f32 %v3589_v30, %v477_v22  ;;  %v3595_v23 = vmax.f32 %v2325_v24, %v2468_v7 }
  0x71   :  { %v516_v12 = vmax.f32 %v3590_v62, %v478_v25  ;;  %v3591_v13 = vld [vmem:[#allocation24_spill] sm:$0xff]  ;;  %v3594_v58 = vld [vmem:[#allocation23_spill] sm:$0xff]  ;;  %v485_v44 = vld [vmem:[#allocation2 + $0x760] sm:$0xff]  ;;  %v522_v63 = vmax.f32 %v521_v31, %v481_v54  ;;  %v524_v30 = vmax.f32 %v523_v60, %v482_v59  ;;  %v581_v22 = vmax.f32 %v506_v2, %v510_v61 }
  0x72   :  { %v3592_v19 = vmax.f32 %v2323_v0, %v3591_v13  ;;  %v3593_v41 = vld [vmem:[#allocation12_spill] sm:$0xff]  ;;  %v483_v15 = vld [vmem:[#allocation2 + $0x750] sm:$0xff]  ;;  %v520_v11 = vmax.f32 %v3595_v23, %v480_v32  ;;  %v486_v18 = vld [vmem:[#allocation2 + $0x768] sm:$0xff]  ;;  %v3596_v0 = vmax.f32 %v2346_v53, %v2488_v14  ;;  %v3597_v62 = vmax.f32 %v2350_v4, %v2490_v26 }
  0x73   :  { %v2623_v36 = vmax.f32 %v3594_v58, %v3593_v41  ;;  %v484_v16 = vld [vmem:[#allocation2 + $0x758] sm:$0xff]  ;;  %v487_v42 = vld [vmem:[#allocation2 + $0x770] sm:$0xff]  ;;  %v584_v24 = vmax.f32 %v508_v46, %v512_v45  ;;  %v489_v7 = vld [vmem:[#allocation2 + $0x780] sm:$0xff]  ;;  %v3601_v53 = vmax.f32 %v2365_v28, %v2496_v21  ;;  %v3602_v4 = vmax.f32 %v2367_v5, %v2510_v9 }
  0x74   :  { %v518_v48 = vmax.f32 %v3592_v19, %v479_v40  ;;  %v488_v25 = vld [vmem:[#allocation2 + $0x778] sm:$0xff]  ;;  %v526_v40 = vmax.f32 %v3596_v0, %v483_v15  ;;  %v528_v13 = vmax.f32 %v3597_v62, %v484_v16  ;;  %v3598_v19 = vmax.f32 %v2352_v51, %v2492_v3  ;;  %v490_v31 = vld [vmem:[#allocation2 + $0x788] sm:$0xff]  ;;  %v491_v60 = vld [vmem:[#allocation2 + $0x790] sm:$0xff] }
  0x75   :  { %v3599_v2 = vld [vmem:[#allocation37_spill] sm:$0xff]  ;;  %v534_v14 = vmax.f32 %v3601_v53, %v487_v42  ;;  %v536_v26 = vmax.f32 %v3602_v4, %v488_v25  ;;  %v582_v32 = vmax.f32 %v581_v22, %v514_v34  ;;  %v492_v54 = vld [vmem:[#allocation2 + $0x798] sm:$0xff]  ;;  %v494_v3 = vld [vmem:[#allocation2 + $0x7a8] sm:$0xff]  ;;  %v3608_v21 = vmax.f32 %v2383_v43, %v2520_v49 }
  0x76   :  { %v530_v41 = vmax.f32 %v3598_v19, %v485_v44  ;;  %v3600_v59 = vmax.f32 %v2354_v47, %v3599_v2  ;;  %v493_v51 = vld [vmem:[#allocation2 + $0x7a0] sm:$0xff]  ;;  %v3603_v46 = vld [vmem:[#allocation40_spill] sm:$0xff]  ;;  %v3605_v15 = vld [vmem:[#allocation31_spill] sm:$0xff]  ;;  %v585_v23 = vmax.f32 %v584_v24, %v516_v12  ;;  %v3609_v22 = vmax.f32 %v2385_v10, %v2522_v37 }
  0x77   :  { %v3604_v45 = vmax.f32 %v2369_v50, %v3603_v46  ;;  %v3606_v16 = vld [vmem:[#allocation41_spill] sm:$0xff]  ;;  %v542_v28 = vmax.f32 %v3608_v21, %v491_v60  ;;  %v495_v9 = vld [vmem:[#allocation2 + $0x7b0] sm:$0xff]  ;;  %v3610_v50 = vld [vmem:[#allocation42_spill] sm:$0xff]  ;;  %v2664_v2 = vmax.f32 %v582_v32, %v518_v48  ;;  %v3615_v24 = vmax.f32 %v2411_v1, %v2536_v52 }
  0x78   :  { %v532_v61 = vmax.f32 %v3600_v59, %v486_v18  ;;  %v3607_v47 = vmax.f32 %v3605_v15, %v3606_v16  ;;  %v496_v18 = vld [vmem:[#allocation2 + $0x7b8] sm:$0xff]  ;;  %v497_v34 = vld [vmem:[#allocation2 + $0x7c0] sm:$0xff]  ;;  %v544_v42 = vmax.f32 %v3609_v22, %v492_v54  ;;  %v3611_v25 = vmax.f32 %v2393_v29, %v3610_v50  ;;  %v3613_v19 = vld [vmem:[#allocation43_spill] sm:$0xff] }
  0x79   :  { %v538_v58 = vmax.f32 %v3604_v45, %v489_v7  ;;  %v3612_v62 = vld [vmem:[#allocation21_spill] sm:$0xff]  ;;  %v498_v43 = vld [vmem:[#allocation2 + $0x7c8] sm:$0xff]  ;;  %v499_v49 = vld [vmem:[#allocation2 + $0x7d0] sm:$0xff]  ;;  %v550_v60 = vmax.f32 %v3615_v24, %v495_v9  ;;  %v3624_v1 = vmax.f32 %v2419_v6, %v2552_v56  ;;  %v602_v6 = vmax.f32 %v520_v11, %v524_v30 }
  0x7a   :  { %v540_v44 = vmax.f32 %v3607_v47, %v490_v31  ;;  %v546_v0 = vmax.f32 %v3611_v25, %v493_v51  ;;  %v3614_v7 = vmax.f32 %v3612_v62, %v3613_v19  ;;  %v500_v12 = vld [vmem:[#allocation2 + $0x7d8] sm:$0xff]  ;;  %v3618_v53 = vld [vmem:[#allocation27_spill] sm:$0xff]  ;;  %v3619_v29 = vld [vmem:[#allocation45_spill] sm:$0xff]  ;;  %v2675_v51 = vmax.f32 %v585_v23, %v520_v11 }
  0x7b   :  { %v3616_v10 = vld [vmem:[#allocation44_spill] sm:$0xff]  ;;  %v3620_v4 = vmax.f32 %v3618_v53, %v3619_v29  ;;  %v502_v32 = vld [vmem:[#allocation2 + $0x7e8] sm:$0xff]  ;;  %v503_v46 = vld [vmem:[#allocation2 + $0x7f0] sm:$0xff]  ;;  %v558_v52 = vmax.f32 %v3624_v1, %v499_v49  ;;  %v3632_v56 = vmax.f32 %v2440_v33, %v2578_v20  ;;  %v617_v49 = vmax.f32 %v530_v41, %v534_v14 }
  0x7c   :  { %v548_v31 = vmax.f32 %v3614_v7, %v494_v3  ;;  %v3617_v37 = vmax.f32 %v2417_v8, %v3616_v10  ;;  %v501_v3 = vld [vmem:[#allocation2 + $0x7e0] sm:$0xff]  ;;  %v3622_v16 = vld [vmem:[#allocation46_spill] sm:$0xff]  ;;  %v3625_v8 = vmax.f32 %v2421_v38, %v2562_v17  ;;  %v504_v22 = vld [vmem:[#allocation2 + $0x7f8] sm:$0xff]  ;;  %v620_v10 = vmax.f32 %v532_v61, %v536_v26 }
  0x7d   :  { %v554_v54 = vmax.f32 %v3620_v4, %v497_v34  ;;  %v3621_v45 = vld [vmem:[#allocation25_spill] sm:$0xff]  ;;  %v3626_v23 = vld [vmem:[#allocation47_spill] sm:$0xff]  ;;  %v3628_v25 = vld [vmem:[#allocation20_spill] sm:$0xff]  ;;  %v568_v38 = vmax.f32 %v3632_v56, %v504_v22  ;;  %v618_v30 = vmax.f32 %v617_v49, %v538_v58 }
  0x7e   :  { %v552_v59 = vmax.f32 %v3617_v37, %v496_v18  ;;  %v3623_v47 = vmax.f32 %v3621_v45, %v3622_v16  ;;  %v560_v9 = vmax.f32 %v3625_v8, %v500_v12  ;;  %v599_v18 = vmax.f32 %v518_v48, %v522_v63  ;;  %v3629_v62 = vld [vmem:[#allocation48_spill] sm:$0xff]  ;;  %v3633_v48 = vld [vmem:[#allocation14_spill] sm:$0xff]  ;;  %v3646_v1 = vld [vmem:[#allocation13_spill] sm:$0xff] }
  0x7f   :  { %v3627_v34 = vmax.f32 %v2434_v55, %v3626_v23  ;;  %v3630_v19 = vmax.f32 %v3628_v25, %v3629_v62  ;;  %v3634_v63 = vmax.f32 %v3633_v48, %v2367_v5  ;;  %v603_v12 = vmax.f32 %v602_v6, %v528_v13  ;;  %v3637_v33 = vld [vmem:[#allocation28_spill] sm:$0xff]  ;;  %v3639_v13 = vld [vmem:[#allocation22_spill] sm:$0xff]  ;;  %v3650_v48 = vld [vmem:[#allocation49_spill] sm:$0xff] }
  0x80   :  { %v556_v21 = vmax.f32 %v3623_v47, %v498_v43  ;;  %v3631_v43 = vmax.f32 %v2438_v57, %v2576_v35  ;;  %v600_v17 = vmax.f32 %v599_v18, %v526_v40  ;;  %v635_v37 = vmax.f32 %v542_v28, %v546_v0  ;;  %v3635_v57 = vld [vmem:[#allocation18_spill] sm:$0xff]  ;;  %v3638_v20 = vld [vmem:[#allocation32_spill] sm:$0xff]  ;;  %v3645_v47 = vld [vmem:[#allocation11_spill] sm:$0xff] }
  0x81   :  { %v562_v50 = vmax.f32 %v3627_v34, %v501_v3  ;;  %v564_v7 = vmax.f32 %v3630_v19, %v502_v32  ;;  %v614_v55 = vmax.f32 %v2379_v27, %v3634_v63  ;;  %v638_v53 = vmax.f32 %v544_v42, %v548_v31  ;;  %v3641_v31 = vld [vmem:[#allocation26_spill] sm:$0xff]  ;;  %v3642_v3 = vld [vmem:[#allocation9_spill] sm:$0xff] }
  0x82   :  { %v566_v24 = vmax.f32 %v3631_v43, %v503_v46  ;;  %v2702_v29 = vmax.f32 %v600_v17, %v530_v41  ;;  %v3636_v35 = vmax.f32 %v3635_v57, %v3605_v15  ;;  %v2709_v40 = vmax.f32 %v3638_v20, %v3637_v33  ;;  %v3640_v41 = vld [vmem:[#allocation10_spill] sm:$0xff] }
  0x83   :  { %v2711_v4 = vmax.f32 %v603_v12, %v532_v61  ;;  %v621_v5 = vmax.f32 %v620_v10, %v540_v44  ;;  %v636_v27 = vmax.f32 %v635_v37, %v550_v60  ;;  %v639_v14 = vmax.f32 %v638_v53, %v552_v59  ;;  %v3644_v60 = vld [vmem:[#allocation29_spill] sm:$0xff]  ;;  %v3649_v56 = vld [vmem:[#allocation34_spill] sm:$0xff] }
  0x84   :  { %v615_v11 = vmax.f32 %v614_v55, %v3636_v35  ;;  %v2716_v0 = vmax.f32 %v618_v30, %v542_v28  ;;  %v3643_v15 = vmax.f32 %v3641_v31, %v3642_v3  ;;  %v653_v58 = vmax.f32 %v554_v54, %v558_v52 }
  0x85   :  { %v2722_v46 = vmax.f32 %v621_v5, %v544_v42  ;;  %v2724_v45 = vmax.f32 %v636_v27, %v554_v54  ;;  %v2726_v61 = vmax.f32 %v639_v14, %v556_v21  ;;  %v656_v44 = vmax.f32 %v556_v21, %v560_v9  ;;  %v3647_v42 = vld [vmem:[#allocation15_spill] sm:$0xff]  ;;  %v3648_v21 = vld [vmem:[#allocation33_spill] sm:$0xff] }
  0x86   :  { %v2714_v26 = vmax.f32 %v615_v11, %v3639_v13  ;;  %v645_v32 = vmax.f32 %v3643_v15, %v3640_v41  ;;  %v654_v16 = vmax.f32 %v653_v58, %v562_v50  ;;  %v660_v28 = vsel %vm659_vm0, %v3645_v47, -inf }
  0x87   :  { %v667_v8 = vsel %vm659_vm0, %v3646_v1, -inf  ;;  %v657_v18 = vmax.f32 %v656_v44, %v564_v7  ;;  %v661_v22 = vrot.slane %v660_v28, 4  ;;  %v674_v54 = vsel %vm659_vm0, %v3647_v42, -inf }
  0x88   :  { %v2729_v59 = vmax.f32 %v645_v32, %v3644_v60  ;;  %v668_v52 = vrot.slane %v667_v8, 4  ;;  %v2737_v23 = vmax.f32 %v654_v16, %v566_v24  ;;  %v675_v34 = vrot.slane %v674_v54, 4 }
  0x89   :  { %v681_v9 = vsel %vm659_vm0, %v3648_v21, -inf  ;;  %v688_v50 = vsel %vm659_vm0, %v2709_v40, -inf  ;;  %v2743_v25 = vmax.f32 %v657_v18, %v568_v38  ;;  %v662_v62 = vmax.f32 %v660_v28, %v661_v22 }
  0x8a   :  { %v669_v19 = vmax.f32 %v667_v8, %v668_v52  ;;  %v682_v43 = vrot.slane %v681_v9, 4  ;;  %v676_v7 = vmax.f32 %v674_v54, %v675_v34  ;;  %v689_v6 = vrot.slane %v688_v50, 4 }
  0x8b   :  { %v695_v17 = vsel %vm659_vm0, %v3649_v56, -inf  ;;  %v702_v24 = vsel %vm659_vm0, %v3650_v48, -inf  ;;  %v663_v63 = vrot.slane %v662_v62, 2  ;;  %v709_v38 = vsel %vm659_vm0, %v2623_v36, -inf }
  0x8c   :  { %v670_v55 = vrot.slane %v669_v19, 2  ;;  %v683_v49 = vmax.f32 %v681_v9, %v682_v43  ;;  %v696_v12 = vrot.slane %v695_v17, 4  ;;  %v677_v10 = vrot.slane %v676_v7, 2  ;;  %v3651_v9 = vld [vmem:[#allocation8_spill] sm:$0xff] }
  0x8d   :  { %v690_v37 = vmax.f32 %v688_v50, %v689_v6  ;;  %v703_v53 = vrot.slane %v702_v24, 4  ;;  %v664_v57 = vmax.f32 %v662_v62, %v663_v63  ;;  %v710_v27 = vrot.slane %v709_v38, 4  ;;  %v3652_v62 = vld [vmem:[#allocation38_spill] sm:$0xff] }
  0x8e   :  { %v671_v35 = vmax.f32 %v669_v19, %v670_v55  ;;  %v684_v11 = vrot.slane %v683_v49, 2  ;;  %v697_v30 = vmax.f32 %v695_v17, %v696_v12  ;;  %v678_v33 = vmax.f32 %v676_v7, %v677_v10 }
  0x8f   :  { %v691_v20 = vrot.slane %v690_v37, 2  ;;  %v704_v5 = vmax.f32 %v702_v24, %v703_v53  ;;  %v665_v14 = vrot.slane %v664_v57, 1  ;;  %v711_v58 = vmax.f32 %v709_v38, %v710_v27 }
  0x90   :  { %v672_v13 = vrot.slane %v671_v35, 1  ;;  %v685_v41 = vmax.f32 %v683_v49, %v684_v11  ;;  %v698_v31 = vrot.slane %v697_v30, 2  ;;  %v679_v3 = vrot.slane %v678_v33, 1 }
  0x91   :  { %v692_v15 = vmax.f32 %v690_v37, %v691_v20  ;;  %v705_v32 = vrot.slane %v704_v5, 2  ;;  %v2751_v44 = vmax.f32 %v664_v57, %v665_v14  ;;  %v712_v52 = vrot.slane %v711_v58, 2 }
  0x92   :  { %v2753_v60 = vmax.f32 %v671_v35, %v672_v13  ;;  %v686_v16 = vrot.slane %v685_v41, 1  ;;  %v699_v28 = vmax.f32 %v697_v30, %v698_v31  ;;  %v2755_v8 = vmax.f32 %v678_v33, %v679_v3 }
  0x93   :  { %v693_v18 = vrot.slane %v692_v15, 1  ;;  %v706_v22 = vmax.f32 %v704_v5, %v705_v32  ;;  %v716_v50 = vsel %vm659_vm0, %v3651_v9, -inf  ;;  %v723_v19 = vsel %vm659_vm0, %v3652_v62, -inf }
  0x94   :  { %v2757_v54 = vmax.f32 %v685_v41, %v686_v16  ;;  %v700_v34 = vrot.slane %v699_v28, 1  ;;  %v713_v6 = vmax.f32 %v711_v58, %v712_v52  ;;  %v717_v17 = vrot.slane %v716_v50, 4 }
  0x95   :  { %v2763_v43 = vmax.f32 %v692_v15, %v693_v18  ;;  %v707_v7 = vrot.slane %v706_v22, 1  ;;  %v724_v63 = vrot.slane %v723_v19, 4  ;;  %v730_v55 = vsel %vm659_vm0, %v2664_v2, -inf }
  0x96   :  { %v2765_v24 = vmax.f32 %v699_v28, %v700_v34  ;;  %v737_v49 = vsel %vm659_vm0, %v2702_v29, -inf  ;;  %v714_v10 = vrot.slane %v713_v6, 1  ;;  %v718_v37 = vmax.f32 %v716_v50, %v717_v17 }
  0x97   :  { %v2771_v12 = vmax.f32 %v706_v22, %v707_v7  ;;  %v731_v53 = vrot.slane %v730_v55, 4  ;;  %v725_v38 = vmax.f32 %v723_v19, %v724_v63  ;;  %v738_v57 = vrot.slane %v737_v49, 4 }
  0x98   :  { %v744_v35 = vsel %vm659_vm0, %v2716_v0, -inf  ;;  %v751_v11 = vsel %vm659_vm0, %v2724_v45, -inf  ;;  %v2777_v30 = vmax.f32 %v713_v6, %v714_v10  ;;  %v719_v33 = vrot.slane %v718_v37, 2 }
  0x99   :  { %3653 = vst [vmem:[#allocation24_spill] sm:$0xff] %v2771_v12  ;;  %v732_v20 = vmax.f32 %v730_v55, %v731_v53  ;;  %v745_v5 = vrot.slane %v744_v35, 4  ;;  %v726_v27 = vrot.slane %v725_v38, 2  ;;  %v739_v14 = vmax.f32 %v737_v49, %v738_v57 }
  0x9a   :  { %3654 = vst [vmem:[#allocation12_spill] sm:$0xff] %v2777_v30  ;;  %v752_v13 = vrot.slane %v751_v11, 4  ;;  %v758_v41 = vsel %vm659_vm0, %v2737_v23, -inf  ;;  %v720_v31 = vmax.f32 %v718_v37, %v719_v33  ;;  %v766_v18 = vsel %vm765_vm1, %v3645_v47, -inf }
  0x9b   :  { %v733_v3 = vrot.slane %v732_v20, 2  ;;  %v746_v15 = vmax.f32 %v744_v35, %v745_v5  ;;  %v759_v32 = vrot.slane %v758_v41, 4  ;;  %v727_v58 = vmax.f32 %v725_v38, %v726_v27 }
  0x9c   :  { %v740_v16 = vrot.slane %v739_v14, 2  ;;  %v753_v28 = vmax.f32 %v751_v11, %v752_v13  ;;  %v721_v22 = vrot.slane %v720_v31, 1  ;;  %v767_v17 = vrot.slane %v766_v18, 4 }
  0x9d   :  { %v734_v52 = vmax.f32 %v732_v20, %v733_v3  ;;  %v747_v34 = vrot.slane %v746_v15, 2  ;;  %v760_v50 = vmax.f32 %v758_v41, %v759_v32  ;;  %v728_v19 = vrot.slane %v727_v58, 1 }
  0x9e   :  { %v741_v7 = vmax.f32 %v739_v14, %v740_v16  ;;  %v754_v6 = vrot.slane %v753_v28, 2  ;;  %v2783_v63 = vmax.f32 %v720_v31, %v721_v22  ;;  %v768_v57 = vmax.f32 %v766_v18, %v767_v17 }
  0x9f   :  { %v735_v55 = vrot.slane %v734_v52, 1  ;;  %v748_v49 = vmax.f32 %v746_v15, %v747_v34  ;;  %v761_v10 = vrot.slane %v760_v50, 2  ;;  %v2785_v37 = vmax.f32 %v727_v58, %v728_v19 }
  0xa0   :  { %3655 = vst [vmem:[#allocation23_spill] sm:$0xff] %v2783_v63  ;;  %v742_v53 = vrot.slane %v741_v7, 1  ;;  %v755_v38 = vmax.f32 %v753_v28, %v754_v6  ;;  %v773_v20 = vsel %vm765_vm1, %v3646_v1, -inf  ;;  %v769_v14 = vrot.slane %v768_v57, 2 }
  0xa1   :  { %3656 = vst [vmem:[#allocation37_spill] sm:$0xff] %v2785_v37  ;;  %v2787_v35 = vmax.f32 %v734_v52, %v735_v55  ;;  %v749_v11 = vrot.slane %v748_v49, 1  ;;  %v762_v33 = vmax.f32 %v760_v50, %v761_v10  ;;  %v774_v13 = vrot.slane %v773_v20, 4 }
  0xa2   :  { %v2791_v5 = vmax.f32 %v741_v7, %v742_v53  ;;  %v756_v27 = vrot.slane %v755_v38, 1  ;;  %v780_v3 = vsel %vm765_vm1, %v3647_v42, -inf  ;;  %v787_v15 = vsel %vm765_vm1, %v3648_v21, -inf }
  0xa3   :  { %3657 = vst [vmem:[#allocation40_spill] sm:$0xff] %v2787_v35  ;;  %v2793_v41 = vmax.f32 %v748_v49, %v749_v11  ;;  %v763_v31 = vrot.slane %v762_v33, 1  ;;  %v770_v58 = vmax.f32 %v768_v57, %v769_v14  ;;  %v775_v16 = vmax.f32 %v773_v20, %v774_v13 }
  0xa4   :  { %3658 = vst [vmem:[#allocation31_spill] sm:$0xff] %v2791_v5  ;;  %v2799_v32 = vmax.f32 %v755_v38, %v756_v27  ;;  %v781_v28 = vrot.slane %v780_v3, 4  ;;  %v788_v22 = vrot.slane %v787_v15, 4  ;;  %v794_v52 = vsel %vm765_vm1, %v2709_v40, -inf }
  0xa5   :  { %3659 = vst [vmem:[#allocation41_spill] sm:$0xff] %v2793_v41  ;;  %v2801_v18 = vmax.f32 %v762_v33, %v763_v31  ;;  %v801_v34 = vsel %vm765_vm1, %v3649_v56, -inf  ;;  %v771_v50 = vrot.slane %v770_v58, 1  ;;  %v776_v19 = vrot.slane %v775_v16, 2 }
  0xa6   :  { %3660 = vst [vmem:[#allocation42_spill] sm:$0xff] %v2799_v32  ;;  %v782_v7 = vmax.f32 %v780_v3, %v781_v28  ;;  %v795_v6 = vrot.slane %v794_v52, 4  ;;  %v789_v17 = vmax.f32 %v787_v15, %v788_v22  ;;  %v802_v55 = vrot.slane %v801_v34, 4 }
  0xa7   :  { %3661 = vst [vmem:[#allocation21_spill] sm:$0xff] %v2801_v18  ;;  %v808_v49 = vsel %vm765_vm1, %v3650_v48, -inf  ;;  %v815_v10 = vsel %vm765_vm1, %v2623_v36, -inf  ;;  %v2811_v53 = vmax.f32 %v770_v58, %v771_v50  ;;  %v777_v38 = vmax.f32 %v775_v16, %v776_v19 }
  0xa8   :  { %v783_v57 = vrot.slane %v782_v7, 2  ;;  %v796_v11 = vmax.f32 %v794_v52, %v795_v6  ;;  %v790_v33 = vrot.slane %v789_v17, 2  ;;  %v803_v20 = vmax.f32 %v801_v34, %v802_v55 }
  0xa9   :  { %v809_v27 = vrot.slane %v808_v49, 4  ;;  %v816_v14 = vrot.slane %v815_v10, 4  ;;  %v778_v13 = vrot.slane %v777_v38, 1  ;;  %v822_v15 = vsel %vm765_vm1, %v3651_v9, -inf }
  0xaa   :  { %v784_v31 = vmax.f32 %v782_v7, %v783_v57  ;;  %v797_v3 = vrot.slane %v796_v11, 2  ;;  %v791_v28 = vmax.f32 %v789_v17, %v790_v33  ;;  %v804_v22 = vrot.slane %v803_v20, 2 }
  0xab   :  { %v810_v18 = vmax.f32 %v808_v49, %v809_v27  ;;  %v817_v32 = vmax.f32 %v815_v10, %v816_v14  ;;  %v2815_v41 = vmax.f32 %v777_v38, %v778_v13  ;;  %v823_v50 = vrot.slane %v822_v15, 4 }
  0xac   :  { %v785_v58 = vrot.slane %v784_v31, 1  ;;  %v798_v16 = vmax.f32 %v796_v11, %v797_v3  ;;  %v792_v52 = vrot.slane %v791_v28, 1  ;;  %v805_v34 = vmax.f32 %v803_v20, %v804_v22 }
  0xad   :  { %v811_v19 = vrot.slane %v810_v18, 2  ;;  %v818_v6 = vrot.slane %v817_v32, 2  ;;  %v824_v57 = vmax.f32 %v822_v15, %v823_v50  ;;  %v829_v17 = vsel %vm765_vm1, %v3652_v62, -inf }
  0xae   :  { %v2817_v55 = vmax.f32 %v784_v31, %v785_v58  ;;  %v799_v7 = vrot.slane %v798_v16, 1  ;;  %v2821_v33 = vmax.f32 %v791_v28, %v792_v52  ;;  %v806_v49 = vrot.slane %v805_v34, 1 }
  0xaf   :  { %v812_v10 = vmax.f32 %v810_v18, %v811_v19  ;;  %v819_v38 = vmax.f32 %v817_v32, %v818_v6  ;;  %v825_v11 = vrot.slane %v824_v57, 2  ;;  %v830_v14 = vrot.slane %v829_v17, 4 }
  0xb0   :  { %v2823_v27 = vmax.f32 %v798_v16, %v799_v7  ;;  %v836_v20 = vsel %vm765_vm1, %v2664_v2, -inf  ;;  %v2827_v13 = vmax.f32 %v805_v34, %v806_v49  ;;  %v843_v28 = vsel %vm765_vm1, %v2702_v29, -inf }
  0xb1   :  { %v813_v31 = vrot.slane %v812_v10, 1  ;;  %v820_v3 = vrot.slane %v819_v38, 1  ;;  %v837_v15 = vrot.slane %v836_v20, 4  ;;  %v826_v22 = vmax.f32 %v824_v57, %v825_v11 }
  0xb2   :  { %v831_v58 = vmax.f32 %v829_v17, %v830_v14  ;;  %v850_v32 = vsel %vm765_vm1, %v2716_v0, -inf  ;;  %v844_v52 = vrot.slane %v843_v28, 4  ;;  %v857_v7 = vsel %vm765_vm1, %v2724_v45, -inf }
  0xb3   :  { %v2833_v18 = vmax.f32 %v812_v10, %v813_v31  ;;  %v2835_v16 = vmax.f32 %v819_v38, %v820_v3  ;;  %v838_v50 = vmax.f32 %v836_v20, %v837_v15  ;;  %v827_v19 = vrot.slane %v826_v22, 1 }
  0xb4   :  { %v832_v34 = vrot.slane %v831_v58, 2  ;;  %v851_v6 = vrot.slane %v850_v32, 4  ;;  %v845_v17 = vmax.f32 %v843_v28, %v844_v52  ;;  %v858_v49 = vrot.slane %v857_v7, 4 }
  0xb5   :  { %3662 = vst [vmem:[#allocation43_spill] sm:$0xff] %v2835_v16  ;;  %v839_v57 = vrot.slane %v838_v50, 2  ;;  %v864_v11 = vsel %vm765_vm1, %v2737_v23, -inf  ;;  %v2841_v14 = vmax.f32 %v826_v22, %v827_v19  ;;  %v872_v5 = vsel %vm871_vm2, %v3645_v47, -inf }
  0xb6   :  { %v833_v10 = vmax.f32 %v831_v58, %v832_v34  ;;  %v852_v31 = vmax.f32 %v850_v32, %v851_v6  ;;  %v865_v38 = vrot.slane %v864_v11, 4  ;;  %v846_v20 = vrot.slane %v845_v17, 2 }
  0xb7   :  { %3663 = vst [vmem:[#allocation44_spill] sm:$0xff] %v2841_v14  ;;  %v840_v3 = vmax.f32 %v838_v50, %v839_v57  ;;  %v859_v15 = vmax.f32 %v857_v7, %v858_v49  ;;  %v873_v30 = vrot.slane %v872_v5, 4  ;;  %v879_v22 = vsel %vm871_vm2, %v3646_v1, -inf }
  0xb8   :  { %v834_v35 = vrot.slane %v833_v10, 1  ;;  %v853_v37 = vrot.slane %v852_v31, 2  ;;  %v866_v63 = vmax.f32 %v864_v11, %v865_v38  ;;  %v847_v52 = vmax.f32 %v845_v17, %v846_v20 }
  0xb9   :  { %v841_v28 = vrot.slane %v840_v3, 1  ;;  %v860_v16 = vrot.slane %v859_v15, 2  ;;  %v874_v50 = vmax.f32 %v872_v5, %v873_v30  ;;  %v880_v57 = vrot.slane %v879_v22, 4 }
  0xba   :  { %v2847_v19 = vmax.f32 %v833_v10, %v834_v35  ;;  %v854_v58 = vmax.f32 %v852_v31, %v853_v37  ;;  %v867_v32 = vrot.slane %v866_v63, 2  ;;  %v848_v6 = vrot.slane %v847_v52, 1 }
  0xbb   :  { %v2849_v34 = vmax.f32 %v840_v3, %v841_v28  ;;  %v861_v7 = vmax.f32 %v859_v15, %v860_v16  ;;  %v875_v11 = vrot.slane %v874_v50, 2  ;;  %v886_v17 = vsel %vm871_vm2, %v3647_v42, -inf }
  0xbc   :  { %3664 = vst [vmem:[#allocation27_spill] sm:$0xff] %v2847_v19  ;;  %v855_v49 = vrot.slane %v854_v58, 1  ;;  %v868_v14 = vmax.f32 %v866_v63, %v867_v32  ;;  %v2853_v38 = vmax.f32 %v847_v52, %v848_v6  ;;  %v881_v12 = vmax.f32 %v879_v22, %v880_v57 }
  0xbd   :  { %3665 = vst [vmem:[#allocation45_spill] sm:$0xff] %v2849_v34  ;;  %v862_v20 = vrot.slane %v861_v7, 1  ;;  %v887_v35 = vrot.slane %v886_v17, 4  ;;  %v876_v30 = vmax.f32 %v874_v50, %v875_v11  ;;  %v893_v5 = vsel %vm871_vm2, %v3648_v21, -inf }
  0xbe   :  { %3666 = vst [vmem:[#allocation25_spill] sm:$0xff] %v2853_v38  ;;  %v2855_v10 = vmax.f32 %v854_v58, %v855_v49  ;;  %v869_v37 = vrot.slane %v868_v14, 1  ;;  %v882_v31 = vrot.slane %v881_v12, 2  ;;  %v894_v3 = vrot.slane %v893_v5, 4 }
  0xbf   :  { %v2859_v16 = vmax.f32 %v861_v7, %v862_v20  ;;  %v888_v63 = vmax.f32 %v886_v17, %v887_v35  ;;  %v877_v28 = vrot.slane %v876_v30, 1  ;;  %v900_v52 = vsel %vm871_vm2, %v2709_v40, -inf }
  0xc0   :  { %3667 = vst [vmem:[#allocation46_spill] sm:$0xff] %v2855_v10  ;;  %v2861_v15 = vmax.f32 %v868_v14, %v869_v37  ;;  %v907_v22 = vsel %vm871_vm2, %v3649_v56, -inf  ;;  %v883_v58 = vmax.f32 %v881_v12, %v882_v31  ;;  %v895_v50 = vmax.f32 %v893_v5, %v894_v3 }
  0xc1   :  { %3668 = vst [vmem:[#allocation47_spill] sm:$0xff] %v2859_v16  ;;  %v889_v32 = vrot.slane %v888_v63, 2  ;;  %v901_v6 = vrot.slane %v900_v52, 4  ;;  %v2867_v57 = vmax.f32 %v876_v30, %v877_v28  ;;  %v908_v7 = vrot.slane %v907_v22, 4 }
  0xc2   :  { %3669 = vst [vmem:[#allocation20_spill] sm:$0xff] %v2861_v15  ;;  %v914_v49 = vsel %vm871_vm2, %v3650_v48, -inf  ;;  %v921_v14 = vsel %vm871_vm2, %v2623_v36, -inf  ;;  %v884_v11 = vrot.slane %v883_v58, 1  ;;  %v896_v20 = vrot.slane %v895_v50, 2 }
  0xc3   :  { %3670 = vst [vmem:[#allocation48_spill] sm:$0xff] %v2867_v57  ;;  %v890_v17 = vmax.f32 %v888_v63, %v889_v32  ;;  %v902_v35 = vmax.f32 %v900_v52, %v901_v6  ;;  %v909_v37 = vmax.f32 %v907_v22, %v908_v7  ;;  %v915_v15 = vrot.slane %v914_v49, 4 }
  0xc4   :  { %v922_v16 = vrot.slane %v921_v14, 4  ;;  %v928_v12 = vsel %vm871_vm2, %v3651_v9, -inf  ;;  %v2875_v5 = vmax.f32 %v883_v58, %v884_v11  ;;  %v897_v31 = vmax.f32 %v895_v50, %v896_v20 }
  0xc5   :  { %v891_v30 = vrot.slane %v890_v17, 1  ;;  %v903_v3 = vrot.slane %v902_v35, 2  ;;  %v910_v28 = vrot.slane %v909_v37, 2  ;;  %v916_v57 = vmax.f32 %v914_v49, %v915_v15 }
  0xc6   :  { %v923_v10 = vmax.f32 %v921_v14, %v922_v16  ;;  %v929_v38 = vrot.slane %v928_v12, 4  ;;  %v898_v63 = vrot.slane %v897_v31, 1  ;;  %v935_v52 = vsel %vm871_vm2, %v3652_v62, -inf }
  0xc7   :  { %v2877_v34 = vmax.f32 %v890_v17, %v891_v30  ;;  %v904_v32 = vmax.f32 %v902_v35, %v903_v3  ;;  %v911_v22 = vmax.f32 %v909_v37, %v910_v28  ;;  %v917_v6 = vrot.slane %v916_v57, 2 }
  0xc8   :  { %v924_v7 = vrot.slane %v923_v10, 2  ;;  %v930_v19 = vmax.f32 %v928_v12, %v929_v38  ;;  %v2881_v58 = vmax.f32 %v897_v31, %v898_v63  ;;  %v936_v50 = vrot.slane %v935_v52, 4 }
  0xc9   :  { %v905_v11 = vrot.slane %v904_v32, 1  ;;  %v942_v15 = vsel %vm871_vm2, %v2664_v2, -inf  ;;  %v912_v16 = vrot.slane %v911_v22, 1  ;;  %v918_v49 = vmax.f32 %v916_v57, %v917_v6 }
  0xca   :  { %3671 = vst [vmem:[#allocation14_spill] sm:$0xff] %v2881_v58  ;;  %v925_v14 = vmax.f32 %v923_v10, %v924_v7  ;;  %v931_v17 = vrot.slane %v930_v19, 2  ;;  %v937_v35 = vmax.f32 %v935_v52, %v936_v50  ;;  %v943_v30 = vrot.slane %v942_v15, 4 }
  0xcb   :  { %v2885_v20 = vmax.f32 %v904_v32, %v905_v11  ;;  %v949_v37 = vsel %vm871_vm2, %v2702_v29, -inf  ;;  %v2889_v3 = vmax.f32 %v911_v22, %v912_v16  ;;  %v919_v38 = vrot.slane %v918_v49, 1 }
  0xcc   :  { %v926_v12 = vrot.slane %v925_v14, 1  ;;  %v932_v31 = vmax.f32 %v930_v19, %v931_v17  ;;  %v938_v28 = vrot.slane %v937_v35, 2  ;;  %v944_v63 = vmax.f32 %v942_v15, %v943_v30 }
  0xcd   :  { %3672 = vst [vmem:[#allocation18_spill] sm:$0xff] %v2889_v3  ;;  %v950_v58 = vrot.slane %v949_v37, 4  ;;  %v956_v57 = vsel %vm871_vm2, %v2716_v0, -inf  ;;  %v2893_v10 = vmax.f32 %v918_v49, %v919_v38  ;;  %v963_v22 = vsel %vm871_vm2, %v2724_v45, -inf }
  0xce   :  { %v2895_v32 = vmax.f32 %v925_v14, %v926_v12  ;;  %v933_v52 = vrot.slane %v932_v31, 1  ;;  %v957_v6 = vrot.slane %v956_v57, 4  ;;  %v939_v7 = vmax.f32 %v937_v35, %v938_v28 }
  0xcf   :  { %3673 = vst [vmem:[#allocation28_spill] sm:$0xff] %v2893_v10  ;;  %v945_v11 = vrot.slane %v944_v63, 2  ;;  %v951_v50 = vmax.f32 %v949_v37, %v950_v58  ;;  %v964_v15 = vrot.slane %v963_v22, 4  ;;  %v970_v17 = vsel %vm871_vm2, %v2737_v23, -inf }
  0xd0   :  { %3674 = vst [vmem:[#allocation32_spill] sm:$0xff] %v2895_v32  ;;  %v2899_v16 = vmax.f32 %v932_v31, %v933_v52  ;;  %v958_v19 = vmax.f32 %v956_v57, %v957_v6  ;;  %v940_v30 = vrot.slane %v939_v7, 1  ;;  %v971_v14 = vrot.slane %v970_v17, 4  ;;  %v3677_v6 = vld [vmem:[#allocation30_spill] sm:$0xff] }
  0xd1   :  { %v946_v49 = vmax.f32 %v944_v63, %v945_v11  ;;  %v952_v38 = vrot.slane %v951_v50, 2  ;;  %v965_v32 = vmax.f32 %v963_v22, %v964_v15  ;;  %v978_v57 = vsel %vm977_vm3, %v3645_v47, -inf }
  0xd2   :  { %3675 = vst [vmem:[#allocation22_spill] sm:$0xff] %v2899_v16  ;;  %v959_v12 = vrot.slane %v958_v19, 2  ;;  %v2903_v35 = vmax.f32 %v939_v7, %v940_v30  ;;  %v972_v28 = vmax.f32 %v970_v17, %v971_v14  ;;  %v980_v16 = vsel %vm979_vm4, %v3677_v6, -inf }
  0xd3   :  { %v947_v58 = vrot.slane %v946_v49, 1  ;;  %v953_v37 = vmax.f32 %v951_v50, %v952_v38  ;;  %v966_v52 = vrot.slane %v965_v32, 2  ;;  %v981_v22 = vmax.f32 %v978_v57, %v980_v16  ;;  %v3679_v50 = vld [vmem:[#allocation17_spill] sm:$0xff]  ;;  %v3682_v16 = vld [vmem:[#allocation35_spill] sm:$0xff] }
  0xd4   :  { %3676 = vst [vmem:[#allocation10_spill] sm:$0xff] %v2903_v35  ;;  %v960_v31 = vmax.f32 %v958_v19, %v959_v12  ;;  %v973_v10 = vrot.slane %v972_v28, 2  ;;  %v988_v7 = vsel %vm977_vm3, %v3646_v1, -inf  ;;  %v989_v19 = vsel %vm979_vm4, %v3679_v50, -inf }
  0xd5   :  { %v2909_v63 = vmax.f32 %v946_v49, %v947_v58  ;;  %v954_v11 = vrot.slane %v953_v37, 1  ;;  %v967_v3 = vmax.f32 %v965_v32, %v966_v52  ;;  %v982_v47 = vrot.slane %v981_v22, 4 }
  0xd6   :  { %v961_v15 = vrot.slane %v960_v31, 1  ;;  %v974_v30 = vmax.f32 %v972_v28, %v973_v10  ;;  %v990_v38 = vmax.f32 %v988_v7, %v989_v19  ;;  %v997_v12 = vsel %vm977_vm3, %v3647_v42, -inf }
  0xd7   :  { %3678 = vst [vmem:[#allocation26_spill] sm:$0xff] %v2909_v63  ;;  %v2915_v17 = vmax.f32 %v953_v37, %v954_v11  ;;  %v968_v49 = vrot.slane %v967_v3, 1  ;;  %v998_v32 = vsel %vm979_vm4, %v3682_v16, -inf  ;;  %v983_v52 = vmax.f32 %v981_v22, %v982_v47  ;;  %v3684_v37 = vld [vmem:[#allocation16_spill] sm:$0xff]  ;;  %v3686_v47 = vld [vmem:[#allocation19_spill] sm:$0xff] }
  0xd8   :  { %v2917_v14 = vmax.f32 %v960_v31, %v961_v15  ;;  %v975_v58 = vrot.slane %v974_v30, 1  ;;  %v991_v1 = vrot.slane %v990_v38, 4  ;;  %v999_v57 = vmax.f32 %v997_v12, %v998_v32 }
  0xd9   :  { %3680 = vst [vmem:[#allocation9_spill] sm:$0xff] %v2915_v17  ;;  %v2923_v63 = vmax.f32 %v967_v3, %v968_v49  ;;  %v1006_v10 = vsel %vm977_vm3, %v3648_v21, -inf  ;;  %v1007_v28 = vsel %vm979_vm4, %v3684_v37, -inf  ;;  %v1015_v31 = vsel %vm977_vm3, %v2709_v40, -inf }
  0xda   :  { %3681 = vst [vmem:[#allocation29_spill] sm:$0xff] %v2917_v14  ;;  %v2931_v11 = vmax.f32 %v974_v30, %v975_v58  ;;  %v984_v42 = vrot.slane %v983_v52, 2  ;;  %v992_v15 = vmax.f32 %v990_v38, %v991_v1  ;;  %v1000_v7 = vrot.slane %v999_v57, 4 }
  0xdb   :  { %3683 = vst [vmem:[#allocation11_spill] sm:$0xff] %v2923_v63  ;;  %v1008_v19 = vmax.f32 %v1006_v10, %v1007_v28  ;;  %v1016_v22 = vsel %vm979_vm4, %v2729_v59, -inf  ;;  %v1024_v3 = vsel %vm977_vm3, %v3649_v56, -inf  ;;  %v1025_v21 = vsel %vm979_vm4, %v3686_v47, -inf }
  0xdc   :  { %3685 = vst [vmem:[#allocation13_spill] sm:$0xff] %v2931_v11  ;;  %v985_v49 = vmax.f32 %v983_v52, %v984_v42  ;;  %v993_v12 = vrot.slane %v992_v15, 2  ;;  %v1001_v32 = vmax.f32 %v999_v57, %v1000_v7  ;;  %v1017_v63 = vmax.f32 %v1015_v31, %v1016_v22 }
  0xdd   :  { %v1009_v40 = vrot.slane %v1008_v19, 4  ;;  %v1026_v30 = vmax.f32 %v1024_v3, %v1025_v21  ;;  %v1033_v38 = vsel %vm977_vm3, %v3650_v48, -inf  ;;  %v1034_v58 = vsel %vm979_vm4, %v2610_v39, -inf }
  0xde   :  { %v986_v1 = vrot.slane %v985_v49, 1  ;;  %v994_v10 = vmax.f32 %v992_v15, %v993_v12  ;;  %v1002_v28 = vrot.slane %v1001_v32, 2  ;;  %v1018_v11 = vrot.slane %v1017_v63, 4 }
  0xdf   :  { %v1010_v56 = vmax.f32 %v1008_v19, %v1009_v40  ;;  %v1027_v14 = vrot.slane %v1026_v30, 4  ;;  %v1035_v17 = vmax.f32 %v1033_v38, %v1034_v58  ;;  %v1042_v52 = vsel %vm977_vm3, %v2623_v36, -inf }
  0xe0   :  { %v2945_v57 = vmax.f32 %v985_v49, %v986_v1  ;;  %v995_v31 = vrot.slane %v994_v10, 1  ;;  %v1003_v42 = vmax.f32 %v1001_v32, %v1002_v28  ;;  %v1019_v7 = vmax.f32 %v1017_v63, %v1018_v11 }
  0xe1   :  { %v1011_v22 = vrot.slane %v1010_v56, 2  ;;  %v1028_v48 = vmax.f32 %v1026_v30, %v1027_v14  ;;  %v1036_v3 = vrot.slane %v1035_v17, 4  ;;  %v1043_v21 = vsel %vm979_vm4, %v2714_v26, -inf  ;;  %v3688_v14 = vld [vmem:[#allocation36_spill] sm:$0xff] }
  0xe2   :  { %v2949_v15 = vmax.f32 %v994_v10, %v995_v31  ;;  %v1004_v12 = vrot.slane %v1003_v42, 1  ;;  %v1020_v19 = vrot.slane %v1019_v7, 2  ;;  %v1044_v40 = vmax.f32 %v1042_v52, %v1043_v21 }
  0xe3   :  { %v1012_v38 = vmax.f32 %v1010_v56, %v1011_v22  ;;  %v1029_v58 = vrot.slane %v1028_v48, 2  ;;  %v1037_v35 = vmax.f32 %v1035_v17, %v1036_v3  ;;  %v1051_v36 = vsel %vm977_vm3, %v3651_v9, -inf  ;;  %v3689_v17 = vld [vmem:[#allocation39_spill] sm:$0xff] }
  0xe4   :  { %3687 = vst [vmem:[#allocation15_spill] sm:$0xff] %v2949_v15  ;;  %v2953_v49 = vmax.f32 %v1003_v42, %v1004_v12  ;;  %v1021_v63 = vmax.f32 %v1019_v7, %v1020_v19  ;;  %v1045_v11 = vrot.slane %v1044_v40, 4  ;;  %v1052_v32 = vsel %vm979_vm4, %v3688_v14, -inf }
  0xe5   :  { %v1013_v30 = vrot.slane %v1012_v38, 1  ;;  %v1030_v1 = vmax.f32 %v1028_v48, %v1029_v58  ;;  %v1038_v10 = vrot.slane %v1037_v35, 2  ;;  %v1053_v28 = vmax.f32 %v1051_v36, %v1052_v32 }
  0xe6   :  { %v1022_v31 = vrot.slane %v1021_v63, 1  ;;  %v1046_v15 = vmax.f32 %v1044_v40, %v1045_v11  ;;  %v1060_v56 = vsel %vm977_vm3, %v3652_v62, -inf  ;;  %v1061_v52 = vsel %vm979_vm4, %v3689_v17, -inf }
  0xe7   :  { %v2961_v9 = vmax.f32 %v1012_v38, %v1013_v30  ;;  %v1031_v42 = vrot.slane %v1030_v1, 1  ;;  %v1039_v7 = vmax.f32 %v1037_v35, %v1038_v10  ;;  %v1054_v22 = vrot.slane %v1053_v28, 4 }
  0xe8   :  { %v2963_v3 = vmax.f32 %v1021_v63, %v1022_v31  ;;  %v1047_v21 = vrot.slane %v1046_v15, 2  ;;  %v1062_v12 = vmax.f32 %v1060_v56, %v1061_v52  ;;  %v1069_v48 = vsel %vm977_vm3, %v2664_v2, -inf }
  0xe9   :  { %v2967_v19 = vmax.f32 %v1030_v1, %v1031_v42  ;;  %v1040_v40 = vrot.slane %v1039_v7, 1  ;;  %v1055_v58 = vmax.f32 %v1053_v28, %v1054_v22  ;;  %v1070_v62 = vsel %vm979_vm4, %v2675_v51, -inf }
  0xea   :  { %3690 = vst [vmem:[#allocation33_spill] sm:$0xff] %v2963_v3  ;;  %v1048_v36 = vmax.f32 %v1046_v15, %v1047_v21  ;;  %v1063_v38 = vrot.slane %v1062_v12, 4  ;;  %v1071_v11 = vmax.f32 %v1069_v48, %v1070_v62  ;;  %v1078_v35 = vsel %vm977_vm3, %v2702_v29, -inf }
  0xeb   :  { %3691 = vst [vmem:[#allocation34_spill] sm:$0xff] %v2967_v19  ;;  %v2973_v63 = vmax.f32 %v1039_v7, %v1040_v40  ;;  %v1056_v32 = vrot.slane %v1055_v58, 2  ;;  %v1079_v30 = vsel %vm979_vm4, %v2711_v4, -inf  ;;  %v1087_v2 = vsel %vm977_vm3, %v2716_v0, -inf }
  0xec   :  { %v1049_v1 = vrot.slane %v1048_v36, 1  ;;  %v1064_v10 = vmax.f32 %v1062_v12, %v1063_v38  ;;  %v1072_v28 = vrot.slane %v1071_v11, 4  ;;  %v1080_v31 = vmax.f32 %v1078_v35, %v1079_v30 }
  0xed   :  { %3692 = vst [vmem:[#allocation49_spill] sm:$0xff] %v2973_v63  ;;  %v1057_v56 = vmax.f32 %v1055_v58, %v1056_v32  ;;  %v1088_v15 = vsel %vm979_vm4, %v2722_v46, -inf  ;;  %v1096_v29 = vsel %vm977_vm3, %v2724_v45, -inf  ;;  %v1097_v52 = vsel %vm979_vm4, %v2726_v61, -inf }
  0xee   :  { %v2985_v42 = vmax.f32 %v1048_v36, %v1049_v1  ;;  %v1065_v7 = vrot.slane %v1064_v10, 2  ;;  %v1073_v22 = vmax.f32 %v1071_v11, %v1072_v28  ;;  %v1081_v21 = vrot.slane %v1080_v31, 4 }
  0xef   :  { %v1058_v0 = vrot.slane %v1057_v56, 1  ;;  %v1089_v48 = vmax.f32 %v1087_v2, %v1088_v15  ;;  %v1098_v12 = vmax.f32 %v1096_v29, %v1097_v52  ;;  %v1105_v40 = vsel %vm977_vm3, %v2737_v23, -inf }
  0xf0   :  { %3693 = vst [vmem:[#allocation8_spill] sm:$0xff] %v2985_v42  ;;  %v1066_v58 = vmax.f32 %v1064_v10, %v1065_v7  ;;  %v1074_v62 = vrot.slane %v1073_v22, 2  ;;  %v1082_v38 = vmax.f32 %v1080_v31, %v1081_v21  ;;  %v1106_v45 = vsel %vm979_vm4, %v2743_v25, -inf }
  0xf1   :  { %v2991_v35 = vmax.f32 %v1057_v56, %v1058_v0  ;;  %v1090_v32 = vrot.slane %v1089_v48, 4  ;;  %v1099_v36 = vrot.slane %v1098_v12, 4  ;;  %v1107_v30 = vmax.f32 %v1105_v40, %v1106_v45 }
  0xf2   :  { %v1067_v1 = vrot.slane %v1066_v58, 1  ;;  %v1075_v11 = vmax.f32 %v1073_v22, %v1074_v62  ;;  %v1083_v28 = vrot.slane %v1082_v38, 2  ;;  %v1115_v23 = vsel %vm1114_vm5, %v3677_v6, -inf }
  0xf3   :  { %3694 = vst [vmem:[#allocation38_spill] sm:$0xff] %v2991_v35  ;;  %v1091_v2 = vmax.f32 %v1089_v48, %v1090_v32  ;;  %v1100_v15 = vmax.f32 %v1098_v12, %v1099_v36  ;;  %v1108_v29 = vrot.slane %v1107_v30, 4  ;;  %v1116_v7 = vrot.slane %v1115_v23, 4 }
  0xf4   :  { %v2995_v10 = vmax.f32 %v1066_v58, %v1067_v1  ;;  %v1076_v31 = vrot.slane %v1075_v11, 1  ;;  %v1084_v52 = vmax.f32 %v1082_v38, %v1083_v28  ;;  %v1122_v40 = vsel %vm1114_vm5, %v3679_v50, -inf }
  0xf5   :  { %v1092_v56 = vrot.slane %v1091_v2, 2  ;;  %v1101_v21 = vrot.slane %v1100_v15, 2  ;;  %v1109_v0 = vmax.f32 %v1107_v30, %v1108_v29  ;;  %v1117_v48 = vmax.f32 %v1115_v23, %v1116_v7 }
  0xf6   :  { %3695 = vst [vmem:[#allocation30_spill] sm:$0xff] %v2995_v10  ;;  %v2999_v22 = vmax.f32 %v1075_v11, %v1076_v31  ;;  %v1085_v62 = vrot.slane %v1084_v52, 1  ;;  %v1123_v12 = vrot.slane %v1122_v40, 4  ;;  %v1129_v58 = vsel %vm1114_vm5, %v3682_v16, -inf }
  0xf7   :  { %v1093_v45 = vmax.f32 %v1091_v2, %v1092_v56  ;;  %v1102_v32 = vmax.f32 %v1100_v15, %v1101_v21  ;;  %v1110_v36 = vrot.slane %v1109_v0, 2  ;;  %v1118_v38 = vrot.slane %v1117_v48, 2 }
  0xf8   :  { %3696 = vst [vmem:[#allocation17_spill] sm:$0xff] %v2999_v22  ;;  %v3003_v1 = vmax.f32 %v1084_v52, %v1085_v62  ;;  %v1124_v28 = vmax.f32 %v1122_v40, %v1123_v12  ;;  %v1130_v10 = vrot.slane %v1129_v58, 4  ;;  %v1136_v11 = vsel %vm1114_vm5, %v3684_v37, -inf }
  0xf9   :  { %v1094_v30 = vrot.slane %v1093_v45, 1  ;;  %v1103_v29 = vrot.slane %v1102_v32, 1  ;;  %v1111_v35 = vmax.f32 %v1109_v0, %v1110_v36  ;;  %v1119_v31 = vmax.f32 %v1117_v48, %v1118_v38 }
  0xfa   :  { %3697 = vst [vmem:[#allocation35_spill] sm:$0xff] %v3003_v1  ;;  %v1125_v23 = vrot.slane %v1124_v28, 2  ;;  %v1131_v7 = vmax.f32 %v1129_v58, %v1130_v10  ;;  %v1137_v2 = vrot.slane %v1136_v11, 4  ;;  %v1143_v52 = vsel %vm1114_vm5, %v2729_v59, -inf }
  0xfb   :  { %v3007_v15 = vmax.f32 %v1093_v45, %v1094_v30  ;;  %v3009_v56 = vmax.f32 %v1102_v32, %v1103_v29  ;;  %v1112_v21 = vrot.slane %v1111_v35, 1  ;;  %v1120_v40 = vrot.slane %v1119_v31, 1 }
  0xfc   :  { %v1126_v62 = vmax.f32 %v1124_v28, %v1125_v23  ;;  %v1132_v12 = vrot.slane %v1131_v7, 2  ;;  %v1138_v1 = vmax.f32 %v1136_v11, %v1137_v2  ;;  %v1144_v36 = vrot.slane %v1143_v52, 4 }
  0xfd   :  { %3698 = vst [vmem:[#allocation16_spill] sm:$0xff] %v3007_v15  ;;  %3699 = vst [vmem:[#allocation19_spill] sm:$0xff] %v3009_v56  ;;  %v3013_v0 = vmax.f32 %v1111_v35, %v1112_v21  ;;  %v1150_v48 = vsel %vm1114_vm5, %v3686_v47, -inf  ;;  %v1157_v10 = vsel %vm1114_vm5, %v2610_v39, -inf  ;;  %v3019_v45 = vmax.f32 %v1119_v31, %v1120_v40 }
  0xfe   :  { %v1127_v32 = vrot.slane %v1126_v62, 1  ;;  %v1133_v58 = vmax.f32 %v1131_v7, %v1132_v12  ;;  %v1139_v38 = vrot.slane %v1138_v1, 2  ;;  %v1145_v30 = vmax.f32 %v1143_v52, %v1144_v36 }
  0xff   :  { %3700 = vst [vmem:[#allocation36_spill] sm:$0xff] %v3013_v0  ;;  %3701 = vst [vmem:[#allocation39_spill] sm:$0xff] %v3019_v45  ;;  %v1151_v29 = vrot.slane %v1150_v48, 4  ;;  %v1158_v56 = vrot.slane %v1157_v10, 4  ;;  %v1164_v28 = vsel %vm1114_vm5, %v2714_v26, -inf  ;;  %v1171_v31 = vsel %vm1114_vm5, %v3688_v14, -inf }
 0x100   :  { %v3023_v35 = vmax.f32 %v1126_v62, %v1127_v32  ;;  %v1134_v11 = vrot.slane %v1133_v58, 1  ;;  %v1140_v23 = vmax.f32 %v1138_v1, %v1139_v38  ;;  %v1165_v2 = vrot.slane %v1164_v28, 4 }
 0x101   :  { %v1146_v21 = vrot.slane %v1145_v30, 2  ;;  %v1152_v0 = vmax.f32 %v1150_v48, %v1151_v29  ;;  %v1159_v15 = vmax.f32 %v1157_v10, %v1158_v56  ;;  %v1172_v12 = vrot.slane %v1171_v31, 4 }
 0x102   :  { %3702 = vst [vmem:[#allocation50_spill] sm:$0xff] %v3023_v35  ;;  %v3027_v40 = vmax.f32 %v1133_v58, %v1134_v11  ;;  %v1141_v7 = vrot.slane %v1140_v23, 1  ;;  %v1166_v52 = vmax.f32 %v1164_v28, %v1165_v2  ;;  %v1178_v62 = vsel %vm1114_vm5, %v3689_v17, -inf }
 0x103   :  { %v1147_v36 = vmax.f32 %v1145_v30, %v1146_v21  ;;  %v1153_v45 = vrot.slane %v1152_v0, 2  ;;  %v1160_v22 = vrot.slane %v1159_v15, 2  ;;  %v1173_v38 = vmax.f32 %v1171_v31, %v1172_v12 }
 0x104   :  { %3703 = vst [vmem:[#allocation51_spill] sm:$0xff] %v3027_v40  ;;  %v3031_v32 = vmax.f32 %v1140_v23, %v1141_v7  ;;  %v1167_v1 = vrot.slane %v1166_v52, 2  ;;  %v1179_v48 = vrot.slane %v1178_v62, 4  ;;  %v1185_v58 = vsel %vm1114_vm5, %v2675_v51, -inf }
 0x105   :  { %v1148_v56 = vrot.slane %v1147_v36, 1  ;;  %v1154_v10 = vmax.f32 %v1152_v0, %v1153_v45  ;;  %v1161_v29 = vmax.f32 %v1159_v15, %v1160_v22  ;;  %v1174_v28 = vrot.slane %v1173_v38, 2 }
 0x106   :  { %3704 = vst [vmem:[#allocation52_spill] sm:$0xff] %v3031_v32  ;;  %v1168_v11 = vmax.f32 %v1166_v52, %v1167_v1  ;;  %v1180_v2 = vmax.f32 %v1178_v62, %v1179_v48  ;;  %v1186_v30 = vrot.slane %v1185_v58, 4  ;;  %v1192_v23 = vsel %vm1114_vm5, %v2711_v4, -inf }
 0x107   :  { %v3035_v21 = vmax.f32 %v1147_v36, %v1148_v56  ;;  %v1155_v40 = vrot.slane %v1154_v10, 1  ;;  %v1162_v35 = vrot.slane %v1161_v29, 1  ;;  %v1175_v31 = vmax.f32 %v1173_v38, %v1174_v28 }
 0x108   :  { %v1169_v7 = vrot.slane %v1168_v11, 1  ;;  %v1181_v12 = vrot.slane %v1180_v2, 2  ;;  %v1187_v32 = vmax.f32 %v1185_v58, %v1186_v30  ;;  %v1193_v15 = vrot.slane %v1192_v23, 4 }
 0x109   :  { %3705 = vst [vmem:[#allocation53_spill] sm:$0xff] %v3035_v21  ;;  %v3039_v0 = vmax.f32 %v1154_v10, %v1155_v40  ;;  %v3041_v22 = vmax.f32 %v1161_v29, %v1162_v35  ;;  %v1199_v45 = vsel %vm1114_vm5, %v2722_v46, -inf  ;;  %v1176_v36 = vrot.slane %v1175_v31, 1 }
 0x10a   :  { %v3045_v52 = vmax.f32 %v1168_v11, %v1169_v7  ;;  %v1182_v62 = vmax.f32 %v1180_v2, %v1181_v12  ;;  %v1188_v1 = vrot.slane %v1187_v32, 2  ;;  %v1194_v48 = vmax.f32 %v1192_v23, %v1193_v15 }
 0x10b   :  { %3706 = vst [vmem:[#allocation54_spill] sm:$0xff] %v3039_v0  ;;  %3707 = vst [vmem:[#allocation55_spill] sm:$0xff] %v3041_v22  ;;  %v1200_v56 = vrot.slane %v1199_v45, 4  ;;  %v1206_v38 = vsel %vm1114_vm5, %v2726_v61, -inf  ;;  %v1213_v40 = vsel %vm1114_vm5, %v2743_v25, -inf  ;;  %v3051_v10 = vmax.f32 %v1175_v31, %v1176_v36 }
 0x10c   :  { %3708 = vst [vmem:[#allocation56_spill] sm:$0xff] %v3045_v52  ;;  %v1183_v35 = vrot.slane %v1182_v62, 1  ;;  %v1189_v29 = vmax.f32 %v1187_v32, %v1188_v1  ;;  %v1207_v58 = vrot.slane %v1206_v38, 4  ;;  %v1195_v28 = vrot.slane %v1194_v48, 2 }
 0x10d   :  { %3709 = vst [vmem:[#allocation57_spill] sm:$0xff] %v3051_v10  ;;  %v1201_v30 = vmax.f32 %v1199_v45, %v1200_v56  ;;  %v1214_v11 = vrot.slane %v1213_v40, 4  ;;  %v1221_v12 = vsel %vm1220_vm6, %v3677_v6, -inf  ;;  %v1228_v32 = vsel %vm1220_vm6, %v3679_v50, -inf }
 0x10e   :  { %v3053_v7 = vmax.f32 %v1182_v62, %v1183_v35  ;;  %v1190_v2 = vrot.slane %v1189_v29, 1  ;;  %v1208_v23 = vmax.f32 %v1206_v38, %v1207_v58  ;;  %v1196_v15 = vmax.f32 %v1194_v48, %v1195_v28 }
 0x10f   :  { %v1202_v52 = vrot.slane %v1201_v30, 2  ;;  %v1215_v22 = vmax.f32 %v1213_v40, %v1214_v11  ;;  %v1222_v0 = vrot.slane %v1221_v12, 4  ;;  %v1235_v45 = vsel %vm1220_vm6, %v3682_v16, -inf }
 0x110   :  { %3710 = vst [vmem:[#allocation58_spill] sm:$0xff] %v3053_v7  ;;  %v3057_v31 = vmax.f32 %v1189_v29, %v1190_v2  ;;  %v1209_v36 = vrot.slane %v1208_v23, 2  ;;  %v1197_v62 = vrot.slane %v1196_v15, 1  ;;  %v1229_v58 = vrot.slane %v1228_v32, 4 }
 0x111   :  { %v1203_v1 = vmax.f32 %v1201_v30, %v1202_v52  ;;  %v1216_v56 = vrot.slane %v1215_v22, 2  ;;  %v1223_v38 = vmax.f32 %v1221_v12, %v1222_v0  ;;  %v1236_v7 = vrot.slane %v1235_v45, 4 }
 0x112   :  { %3711 = vst [vmem:[#allocation59_spill] sm:$0xff] %v3057_v31  ;;  %v1210_v35 = vmax.f32 %v1208_v23, %v1209_v36  ;;  %v1242_v48 = vsel %vm1220_vm6, %v3684_v37, -inf  ;;  %v3065_v40 = vmax.f32 %v1196_v15, %v1197_v62  ;;  %v1230_v31 = vmax.f32 %v1228_v32, %v1229_v58 }
 0x113   :  { %v1204_v29 = vrot.slane %v1203_v1, 1  ;;  %v1217_v28 = vmax.f32 %v1215_v22, %v1216_v56  ;;  %v1224_v11 = vrot.slane %v1223_v38, 2  ;;  %v1237_v10 = vmax.f32 %v1235_v45, %v1236_v7 }
 0x114   :  { %3712 = vst [vmem:[#allocation60_spill] sm:$0xff] %v3065_v40  ;;  %v1211_v2 = vrot.slane %v1210_v35, 1  ;;  %v1243_v21 = vrot.slane %v1242_v48, 4  ;;  %v1249_v0 = vsel %vm1220_vm6, %v2729_v59, -inf  ;;  %v1231_v12 = vrot.slane %v1230_v31, 2 }
 0x115   :  { %v3067_v42 = vmax.f32 %v1203_v1, %v1204_v29  ;;  %v1218_v52 = vrot.slane %v1217_v28, 1  ;;  %v1225_v30 = vmax.f32 %v1223_v38, %v1224_v11  ;;  %v1238_v36 = vrot.slane %v1237_v10, 2 }
 0x116   :  { %v3071_v23 = vmax.f32 %v1210_v35, %v1211_v2  ;;  %v1244_v15 = vmax.f32 %v1242_v48, %v1243_v21  ;;  %v1250_v56 = vrot.slane %v1249_v0, 4  ;;  %v1256_v7 = vsel %vm1220_vm6, %v3686_v47, -inf }
 0x117   :  { %3713 = vst [vmem:[#allocation61_spill] sm:$0xff] %v3067_v42  ;;  %v3073_v62 = vmax.f32 %v1217_v28, %v1218_v52  ;;  %v1226_v22 = vrot.slane %v1225_v30, 1  ;;  %v1232_v32 = vmax.f32 %v1230_v31, %v1231_v12  ;;  %v1239_v45 = vmax.f32 %v1237_v10, %v1238_v36 }
 0x118   :  { %3714 = vst [vmem:[#allocation62_spill] sm:$0xff] %v3071_v23  ;;  %v1245_v1 = vrot.slane %v1244_v15, 2  ;;  %v1257_v58 = vrot.slane %v1256_v7, 4  ;;  %v1251_v29 = vmax.f32 %v1249_v0, %v1250_v56  ;;  %v1263_v35 = vsel %vm1220_vm6, %v2610_v39, -inf }
 0x119   :  { %3715 = vst [vmem:[#allocation63_spill] sm:$0xff] %v3073_v62  ;;  %v3077_v38 = vmax.f32 %v1225_v30, %v1226_v22  ;;  %v1270_v21 = vsel %vm1220_vm6, %v2714_v26, -inf  ;;  %v1233_v48 = vrot.slane %v1232_v32, 1  ;;  %v1240_v28 = vrot.slane %v1239_v45, 1 }
 0x11a   :  { %v1246_v11 = vmax.f32 %v1244_v15, %v1245_v1  ;;  %v1258_v2 = vmax.f32 %v1256_v7, %v1257_v58  ;;  %v1252_v52 = vrot.slane %v1251_v29, 2  ;;  %v1264_v62 = vrot.slane %v1263_v35, 4 }
 0x11b   :  { %3716 = vst [vmem:[#allocation64_spill] sm:$0xff] %v3077_v38  ;;  %v1271_v23 = vrot.slane %v1270_v21, 4  ;;  %v1277_v10 = vsel %vm1220_vm6, %v3688_v14, -inf  ;;  %v3085_v31 = vmax.f32 %v1232_v32, %v1233_v48  ;;  %v3087_v30 = vmax.f32 %v1239_v45, %v1240_v28 }
 0x11c   :  { %v1247_v0 = vrot.slane %v1246_v11, 1  ;;  %v1259_v12 = vrot.slane %v1258_v2, 2  ;;  %v1253_v36 = vmax.f32 %v1251_v29, %v1252_v52  ;;  %v1265_v22 = vmax.f32 %v1263_v35, %v1264_v62 }
 0x11d   :  { %3717 = vst [vmem:[#allocation65_spill] sm:$0xff] %v3085_v31  ;;  %3718 = vst [vmem:[#allocation66_spill] sm:$0xff] %v3087_v30  ;;  %v1272_v56 = vmax.f32 %v1270_v21, %v1271_v23  ;;  %v1278_v38 = vrot.slane %v1277_v10, 4  ;;  %v1284_v7 = vsel %vm1220_vm6, %v3689_v17, -inf  ;;  %v1291_v1 = vsel %vm1220_vm6, %v2675_v51, -inf }
 0x11e   :  { %v3089_v42 = vmax.f32 %v1246_v11, %v1247_v0  ;;  %v1260_v15 = vmax.f32 %v1258_v2, %v1259_v12  ;;  %v1254_v58 = vrot.slane %v1253_v36, 1  ;;  %v1266_v32 = vrot.slane %v1265_v22, 2 }
 0x11f   :  { %v1273_v48 = vrot.slane %v1272_v56, 2  ;;  %v1279_v45 = vmax.f32 %v1277_v10, %v1278_v38  ;;  %v1285_v30 = vrot.slane %v1284_v7, 4  ;;  %v1292_v31 = vrot.slane %v1291_v1, 4 }
 0x120   :  { %3719 = vst [vmem:[#allocation67_spill] sm:$0xff] %v3089_v42  ;;  %v1261_v28 = vrot.slane %v1260_v15, 1  ;;  %v1298_v23 = vsel %vm1220_vm6, %v2711_v4, -inf  ;;  %v3097_v62 = vmax.f32 %v1253_v36, %v1254_v58  ;;  %v1267_v29 = vmax.f32 %v1265_v22, %v1266_v32 }
 0x121   :  { %v1274_v35 = vmax.f32 %v1272_v56, %v1273_v48  ;;  %v1280_v21 = vrot.slane %v1279_v45, 2  ;;  %v1286_v2 = vmax.f32 %v1284_v7, %v1285_v30  ;;  %v1293_v52 = vmax.f32 %v1291_v1, %v1292_v31 }
 0x122   :  { %v3099_v11 = vmax.f32 %v1260_v15, %v1261_v28  ;;  %v1299_v0 = vrot.slane %v1298_v23, 4  ;;  %v1268_v12 = vrot.slane %v1267_v29, 1  ;;  %v1305_v38 = vsel %vm1220_vm6, %v2722_v46, -inf }
 0x123   :  { %v1275_v42 = vrot.slane %v1274_v35, 1  ;;  %v1281_v40 = vmax.f32 %v1279_v45, %v1280_v21  ;;  %v1287_v10 = vrot.slane %v1286_v2, 2  ;;  %v1294_v63 = vrot.slane %v1293_v52, 2 }
 0x124   :  { %v1300_v19 = vmax.f32 %v1298_v23, %v1299_v0  ;;  %v1306_v3 = vrot.slane %v1305_v38, 4  ;;  %v3103_v36 = vmax.f32 %v1267_v29, %v1268_v12  ;;  %v1312_v30 = vsel %vm1220_vm6, %v2726_v61, -inf }
 0x125   :  { %v3105_v22 = vmax.f32 %v1274_v35, %v1275_v42  ;;  %v1282_v56 = vrot.slane %v1281_v40, 1  ;;  %v1288_v31 = vmax.f32 %v1286_v2, %v1287_v10  ;;  %v1295_v15 = vmax.f32 %v1293_v52, %v1294_v63 }
 0x126   :  { %v1301_v7 = vrot.slane %v1300_v19, 2  ;;  %v1307_v1 = vmax.f32 %v1305_v38, %v1306_v3  ;;  %v1313_v32 = vrot.slane %v1312_v30, 4  ;;  %v1319_v48 = vsel %vm1220_vm6, %v2743_v25, -inf }
 0x127   :  { %v3109_v58 = vmax.f32 %v1281_v40, %v1282_v56  ;;  %v1289_v45 = vrot.slane %v1288_v31, 1  ;;  %v1296_v28 = vrot.slane %v1295_v15, 1  ;;  %v1320_v35 = vrot.slane %v1319_v48, 4 }
 0x128   :  { %v1302_v23 = vmax.f32 %v1300_v19, %v1301_v7  ;;  %v1308_v42 = vrot.slane %v1307_v1, 2  ;;  %v1314_v29 = vmax.f32 %v1312_v30, %v1313_v32  ;;  %v1327_v21 = vsel %vm1326_vm7, %v3677_v6, -inf }
 0x129   :  { %v1334_v63 = vsel %vm1326_vm7, %v3679_v50, -inf  ;;  %v3117_v3 = vmax.f32 %v1288_v31, %v1289_v45  ;;  %v3119_v40 = vmax.f32 %v1295_v15, %v1296_v28  ;;  %v1321_v12 = vmax.f32 %v1319_v48, %v1320_v35 }
 0x12a   :  { %v1303_v2 = vrot.slane %v1302_v23, 1  ;;  %v1309_v52 = vmax.f32 %v1307_v1, %v1308_v42  ;;  %v1315_v0 = vrot.slane %v1314_v29, 2  ;;  %v1328_v38 = vrot.slane %v1327_v21, 4 }
 0x12b   :  { %v1335_v10 = vrot.slane %v1334_v63, 4  ;;  %v1341_v30 = vsel %vm1326_vm7, %v3682_v16, -inf  ;;  %v1348_v6 = vsel %vm1326_vm7, %v3684_v37, -inf  ;;  %v1322_v31 = vrot.slane %v1321_v12, 2 }
 0x12c   :  { %v3121_v19 = vmax.f32 %v1302_v23, %v1303_v2  ;;  %v1310_v56 = vrot.slane %v1309_v52, 1  ;;  %v1316_v50 = vmax.f32 %v1314_v29, %v1315_v0  ;;  %v1329_v7 = vmax.f32 %v1327_v21, %v1328_v38 }
 0x12d   :  { %v1336_v15 = vmax.f32 %v1334_v63, %v1335_v10  ;;  %v1342_v1 = vrot.slane %v1341_v30, 4  ;;  %v1349_v45 = vrot.slane %v1348_v6, 4  ;;  %v1355_v48 = vsel %vm1326_vm7, %v2729_v59, -inf }
 0x12e   :  { %3720 = vst [vmem:[#allocation68_spill] sm:$0xff] %v3121_v19  ;;  %v3127_v32 = vmax.f32 %v1309_v52, %v1310_v56  ;;  %v1317_v28 = vrot.slane %v1316_v50, 1  ;;  %v1323_v23 = vmax.f32 %v1321_v12, %v1322_v31  ;;  %v1330_v42 = vrot.slane %v1329_v7, 2 }
 0x12f   :  { %v1337_v35 = vrot.slane %v1336_v15, 2  ;;  %v1343_v2 = vmax.f32 %v1341_v30, %v1342_v1  ;;  %v1350_v16 = vmax.f32 %v1348_v6, %v1349_v45  ;;  %v1356_v19 = vrot.slane %v1355_v48, 4 }
 0x130   :  { %v1362_v37 = vsel %vm1326_vm7, %v3686_v47, -inf  ;;  %v3133_v29 = vmax.f32 %v1316_v50, %v1317_v28  ;;  %v1324_v21 = vrot.slane %v1323_v23, 1  ;;  %v1331_v63 = vmax.f32 %v1329_v7, %v1330_v42 }
 0x131   :  { %v1338_v52 = vmax.f32 %v1336_v15, %v1337_v35  ;;  %v1344_v0 = vrot.slane %v1343_v2, 2  ;;  %v1351_v38 = vrot.slane %v1350_v16, 2  ;;  %v1357_v10 = vmax.f32 %v1355_v48, %v1356_v19 }
 0x132   :  { %v1363_v56 = vrot.slane %v1362_v37, 4  ;;  %v3135_v59 = vmax.f32 %v1323_v23, %v1324_v21  ;;  %v1332_v12 = vrot.slane %v1331_v63, 1  ;;  %v1369_v30 = vsel %vm1326_vm7, %v2610_v39, -inf }
 0x133   :  { %v1339_v31 = vrot.slane %v1338_v52, 1  ;;  %v1345_v6 = vmax.f32 %v1343_v2, %v1344_v0  ;;  %v1352_v1 = vmax.f32 %v1350_v16, %v1351_v38  ;;  %v1358_v45 = vrot.slane %v1357_v10, 2 }
 0x134   :  { %v1364_v47 = vmax.f32 %v1362_v37, %v1363_v56  ;;  %v3139_v50 = vmax.f32 %v1331_v63, %v1332_v12  ;;  %v1370_v7 = vrot.slane %v1369_v30, 4  ;;  %v1376_v19 = vsel %vm1326_vm7, %v2714_v26, -inf }
 0x135   :  { %v3141_v28 = vmax.f32 %v1338_v52, %v1339_v31  ;;  %v1346_v15 = vrot.slane %v1345_v6, 1  ;;  %v1353_v48 = vrot.slane %v1352_v1, 1  ;;  %v1359_v23 = vmax.f32 %v1357_v10, %v1358_v45 }
 0x136   :  { %v1365_v42 = vrot.slane %v1364_v47, 2  ;;  %v1371_v35 = vmax.f32 %v1369_v30, %v1370_v7  ;;  %v1377_v21 = vrot.slane %v1376_v19, 4  ;;  %v1383_v39 = vsel %vm1326_vm7, %v3688_v14, -inf }
 0x137   :  { %v1390_v2 = vsel %vm1326_vm7, %v3689_v17, -inf  ;;  %v3149_v16 = vmax.f32 %v1345_v6, %v1346_v15  ;;  %v3151_v37 = vmax.f32 %v1352_v1, %v1353_v48  ;;  %v1360_v63 = vrot.slane %v1359_v23, 1 }
 0x138   :  { %v1366_v52 = vmax.f32 %v1364_v47, %v1365_v42  ;;  %v1372_v0 = vrot.slane %v1371_v35, 2  ;;  %v1378_v26 = vmax.f32 %v1376_v19, %v1377_v21  ;;  %v1384_v38 = vrot.slane %v1383_v39, 4 }
 0x139   :  { %v1391_v56 = vrot.slane %v1390_v2, 4  ;;  %v3153_v10 = vmax.f32 %v1359_v23, %v1360_v63  ;;  %v1397_v31 = vsel %vm1326_vm7, %v2675_v51, -inf  ;;  %v1404_v14 = vsel %vm1326_vm7, %v2711_v4, -inf }
 0x13a   :  { %v1367_v12 = vrot.slane %v1366_v52, 1  ;;  %v1373_v17 = vmax.f32 %v1371_v35, %v1372_v0  ;;  %v1379_v30 = vrot.slane %v1378_v26, 2  ;;  %v1385_v6 = vmax.f32 %v1383_v39, %v1384_v38 }
 0x13b   :  { %v1392_v1 = vmax.f32 %v1390_v2, %v1391_v56  ;;  %v1398_v47 = vrot.slane %v1397_v31, 4  ;;  %v1405_v7 = vrot.slane %v1404_v14, 4  ;;  %v1411_v19 = vsel %vm1326_vm7, %v2722_v46, -inf }
 0x13c   :  { %v3159_v45 = vmax.f32 %v1366_v52, %v1367_v12  ;;  %v1374_v15 = vrot.slane %v1373_v17, 1  ;;  %v1380_v48 = vmax.f32 %v1378_v26, %v1379_v30  ;;  %v1386_v23 = vrot.slane %v1385_v6, 2 }
 0x13d   :  { %v1393_v42 = vrot.slane %v1392_v1, 2  ;;  %v1399_v21 = vmax.f32 %v1397_v31, %v1398_v47  ;;  %v1406_v51 = vmax.f32 %v1404_v14, %v1405_v7  ;;  %v1412_v63 = vrot.slane %v1411_v19, 4 }
 0x13e   :  { %v1418_v4 = vsel %vm1326_vm7, %v2726_v61, -inf  ;;  %v3165_v35 = vmax.f32 %v1373_v17, %v1374_v15  ;;  %v1381_v39 = vrot.slane %v1380_v48, 1  ;;  %v1387_v2 = vmax.f32 %v1385_v6, %v1386_v23 }
 0x13f   :  { %v1394_v52 = vmax.f32 %v1392_v1, %v1393_v42  ;;  %v1400_v0 = vrot.slane %v1399_v21, 2  ;;  %v1407_v38 = vrot.slane %v1406_v51, 2  ;;  %v1413_v56 = vmax.f32 %v1411_v19, %v1412_v63 }
 0x140   :  { %v1419_v12 = vrot.slane %v1418_v4, 4  ;;  %v3167_v46 = vmax.f32 %v1380_v48, %v1381_v39  ;;  %v1388_v26 = vrot.slane %v1387_v2, 1  ;;  %v1425_v31 = vsel %vm1326_vm7, %v2743_v25, -inf }
 0x141   :  { %v1395_v30 = vrot.slane %v1394_v52, 1  ;;  %v1401_v14 = vmax.f32 %v1399_v21, %v1400_v0  ;;  %v1408_v47 = vmax.f32 %v1406_v51, %v1407_v38  ;;  %v1414_v7 = vrot.slane %v1413_v56, 2  ;;  %v3722_v38 = vld [vmem:[#allocation43_spill] sm:$0xff] }
 0x142   :  { %v1420_v61 = vmax.f32 %v1418_v4, %v1419_v12  ;;  %v3171_v17 = vmax.f32 %v1387_v2, %v1388_v26  ;;  %v1426_v6 = vrot.slane %v1425_v31, 4  ;;  %v1433_v63 = vsel %vm1432_vm8, %v2751_v44, %v2811_v53  ;;  %v3721_v53 = vld [vmem:[#allocation24_spill] sm:$0xff]  ;;  %v3725_v26 = vld [vmem:[#allocation23_spill] sm:$0xff] }
 0x143   :  { %v3173_v15 = vmax.f32 %v1394_v52, %v1395_v30  ;;  %v1402_v1 = vrot.slane %v1401_v14, 1  ;;  %v1409_v19 = vrot.slane %v1408_v47, 1  ;;  %v1415_v23 = vmax.f32 %v1413_v56, %v1414_v7  ;;  %v3723_v56 = vld [vmem:[#allocation12_spill] sm:$0xff]  ;;  %v3727_v30 = vld [vmem:[#allocation37_spill] sm:$0xff]  ;;  %v3731_v7 = vld [vmem:[#allocation31_spill] sm:$0xff] }
 0x144   :  { %v1421_v48 = vrot.slane %v1420_v61, 2  ;;  %v1427_v42 = vmax.f32 %v1425_v31, %v1426_v6  ;;  %v1434_v25 = vsel %vm1432_vm8, %v2753_v60, %v2815_v41  ;;  %v1435_v21 = vsel %vm1432_vm8, %v2755_v8, %v2817_v55  ;;  %v3729_v31 = vld [vmem:[#allocation40_spill] sm:$0xff]  ;;  %v3732_v6 = vld [vmem:[#allocation46_spill] sm:$0xff] }
 0x145   :  { %v3184_v51 = vmax.f32 %v1401_v14, %v1402_v1  ;;  %v3186_v4 = vmax.f32 %v1408_v47, %v1409_v19  ;;  %v1416_v39 = vrot.slane %v1415_v23, 1  ;;  %v1436_v0 = vsel %vm1432_vm8, %v2757_v54, %v2821_v33  ;;  %v3724_v33 = vld [vmem:[#allocation44_spill] sm:$0xff]  ;;  %v3733_v1 = vld [vmem:[#allocation41_spill] sm:$0xff] }
 0x146   :  { %v1422_v2 = vmax.f32 %v1420_v61, %v1421_v48  ;;  %v1428_v52 = vrot.slane %v1427_v42, 2  ;;  %v1437_v44 = vsel %vm1432_vm8, %v2763_v43, %v2823_v27  ;;  %v1438_v60 = vsel %vm1432_vm8, %v2765_v24, %v2827_v13  ;;  %v3726_v27 = vld [vmem:[#allocation27_spill] sm:$0xff]  ;;  %v3728_v13 = vld [vmem:[#allocation45_spill] sm:$0xff]  ;;  %v3735_v48 = vld [vmem:[#allocation42_spill] sm:$0xff] }
 0x147   :  { %v3197_v8 = vmax.f32 %v1415_v23, %v1416_v39  ;;  %v1439_v55 = vsel %vm1432_vm8, %v3721_v53, %v2833_v18  ;;  %v1440_v12 = vsel %vm1432_vm8, %v3723_v56, %v3722_v38  ;;  %v1441_v43 = vsel %vm1432_vm8, %v3725_v26, %v3724_v33  ;;  %v3730_v18 = vld [vmem:[#allocation25_spill] sm:$0xff]  ;;  %v3734_v23 = vld [vmem:[#allocation47_spill] sm:$0xff]  ;;  %v3738_v56 = vld [vmem:[#allocation48_spill] sm:$0xff] }
 0x148   :  { %v1423_v41 = vrot.slane %v1422_v2, 1  ;;  %v1429_v54 = vmax.f32 %v1427_v42, %v1428_v52  ;;  %v1442_v24 = vsel %vm1432_vm8, %v3727_v30, %v3726_v27  ;;  %v1443_v14 = vsel %vm1432_vm8, %v3729_v31, %v3728_v13  ;;  %v3736_v52 = vld [vmem:[#allocation20_spill] sm:$0xff]  ;;  %v3737_v53 = vld [vmem:[#allocation21_spill] sm:$0xff]  ;;  %v3739_v26 = vld [vmem:[#allocation14_spill] sm:$0xff] }
 0x149   :  { %v1444_v61 = vsel %vm1432_vm8, %v3731_v7, %v3730_v18  ;;  %v1445_v19 = vsel %vm1432_vm8, %v3733_v1, %v3732_v6  ;;  %v1446_v42 = vsel %vm1432_vm8, %v3735_v48, %v3734_v23  ;;  %v1447_v38 = vsel %vm1432_vm8, %v3737_v53, %v3736_v52  ;;  %v3740_v13 = vld [vmem:[#allocation18_spill] sm:$0xff]  ;;  %v3741_v7 = vld [vmem:[#allocation28_spill] sm:$0xff]  ;;  %v3748_v48 = vld [vmem:[#allocation11_spill] sm:$0xff] }
 0x14a   :  { %v3214_v47 = vmax.f32 %v1422_v2, %v1423_v41  ;;  %v1430_v39 = vrot.slane %v1429_v54, 1  ;;  %v1448_v2 = vsel %vm979_vm4, %v1433_v63, %v3738_v56  ;;  %v1449_v41 = vsel %vm979_vm4, %v1434_v25, %v2875_v5  ;;  %v3742_v6 = vld [vmem:[#allocation32_spill] sm:$0xff]  ;;  %v3743_v25 = vld [vmem:[#allocation22_spill] sm:$0xff]  ;;  %v3750_v52 = vld [vmem:[#allocation15_spill] sm:$0xff] }
 0x14b   :  { %v1450_v33 = vsel %vm979_vm4, %v1435_v21, %v2877_v34  ;;  %v1451_v27 = vsel %vm979_vm4, %v1436_v0, %v3739_v26  ;;  %v1452_v30 = vsel %vm979_vm4, %v1437_v44, %v2885_v20  ;;  %v1453_v31 = vsel %vm979_vm4, %v1438_v60, %v3740_v13  ;;  %v3744_v21 = vld [vmem:[#allocation10_spill] sm:$0xff]  ;;  %v3746_v44 = vld [vmem:[#allocation9_spill] sm:$0xff]  ;;  %v3754_v13 = vld [vmem:[#allocation8_spill] sm:$0xff] }
 0x14c   :  { %v3240_v18 = vmax.f32 %v1429_v54, %v1430_v39  ;;  %v1454_v63 = vsel %vm979_vm4, %v1439_v55, %v3741_v7  ;;  %v1455_v5 = vsel %vm979_vm4, %v1440_v12, %v3742_v6  ;;  %v1456_v34 = vsel %vm979_vm4, %v1441_v43, %v3743_v25  ;;  %v3745_v1 = vld [vmem:[#allocation26_spill] sm:$0xff]  ;;  %v3747_v54 = vld [vmem:[#allocation29_spill] sm:$0xff]  ;;  %v3759_v6 = vld [vmem:[#allocation16_spill] sm:$0xff] }
 0x14d   :  { %v1457_v0 = vsel %vm979_vm4, %v1442_v24, %v3744_v21  ;;  %v1458_v20 = vsel %vm979_vm4, %v1443_v14, %v3745_v1  ;;  %v1459_v60 = vsel %vm979_vm4, %v1444_v61, %v3746_v44  ;;  %v1460_v23 = vsel %vm979_vm4, %v1445_v19, %v3747_v54  ;;  %v3749_v39 = vld [vmem:[#allocation13_spill] sm:$0xff]  ;;  %v3752_v56 = vld [vmem:[#allocation34_spill] sm:$0xff]  ;;  %v3760_v25 = vld [vmem:[#allocation19_spill] sm:$0xff] }
 0x14e   :  { %v1461_v55 = vsel %vm979_vm4, %v1446_v42, %v3748_v48  ;;  %v1462_v12 = vsel %vm979_vm4, %v1447_v38, %v3749_v39  ;;  %v1463_v43 = vsel %vm659_vm0, %v1448_v2, %v2945_v57  ;;  %v1464_v24 = vsel %vm659_vm0, %v1449_v41, %v3750_v52  ;;  %v3751_v53 = vld [vmem:[#allocation33_spill] sm:$0xff]  ;;  %v3755_v2 = vld [vmem:[#allocation38_spill] sm:$0xff]  ;;  %v3761_v21 = vld [vmem:[#allocation36_spill] sm:$0xff] }
 0x14f   :  { %v1465_v14 = vsel %vm659_vm0, %v1450_v33, %v2953_v49  ;;  %v1466_v61 = vsel %vm659_vm0, %v1451_v27, %v2961_v9  ;;  %v1467_v19 = vsel %vm659_vm0, %v1452_v30, %v3751_v53  ;;  %v1468_v42 = vsel %vm659_vm0, %v1453_v31, %v3752_v56  ;;  %v3753_v26 = vld [vmem:[#allocation49_spill] sm:$0xff]  ;;  %v3756_v7 = vld [vmem:[#allocation30_spill] sm:$0xff]  ;;  %v3758_v27 = vld [vmem:[#allocation35_spill] sm:$0xff] }
 0x150   :  { %v1469_v38 = vsel %vm659_vm0, %v1454_v63, %v3753_v26  ;;  %v1470_v57 = vsel %vm659_vm0, %v1455_v5, %v3754_v13  ;;  %v1471_v41 = vsel %vm659_vm0, %v1456_v34, %v3755_v2  ;;  %v1472_v49 = vsel %vm659_vm0, %v1457_v0, %v3756_v7  ;;  %v3757_v33 = vld [vmem:[#allocation17_spill] sm:$0xff]  ;;  %v3762_v34 = vld [vmem:[#allocation39_spill] sm:$0xff]  ;;  %v3763_v1 = vld [vmem:[#allocation50_spill] sm:$0xff] }
 0x151   :  { %v1473_v9 = vsel %vm659_vm0, %v1458_v20, %v3757_v33  ;;  %v1474_v30 = vsel %vm659_vm0, %v1459_v60, %v3758_v27  ;;  %v1475_v31 = vsel %vm659_vm0, %v1460_v23, %v3759_v6  ;;  %v1476_v63 = vsel %vm659_vm0, %v1461_v55, %v3760_v25  ;;  %v3764_v44 = vld [vmem:[#allocation51_spill] sm:$0xff]  ;;  %v3765_v54 = vld [vmem:[#allocation52_spill] sm:$0xff]  ;;  %v3766_v48 = vld [vmem:[#allocation53_spill] sm:$0xff] }
 0x152   :  { %v1477_v5 = vsel %vm659_vm0, %v1462_v12, %v3761_v21  ;;  %v1479_v0 = vsel %vm1478_vm9, %v1463_v43, %v3762_v34  ;;  %v1480_v20 = vsel %vm1478_vm9, %v1464_v24, %v3763_v1  ;;  %v1481_v60 = vsel %vm1478_vm9, %v1465_v14, %v3764_v44  ;;  %v3767_v39 = vld [vmem:[#allocation54_spill] sm:$0xff]  ;;  %v3768_v52 = vld [vmem:[#allocation55_spill] sm:$0xff]  ;;  %v3769_v56 = vld [vmem:[#allocation56_spill] sm:$0xff] }
 0x153   :  { %v1482_v23 = vsel %vm1478_vm9, %v1466_v61, %v3765_v54  ;;  %v1483_v55 = vsel %vm1478_vm9, %v1467_v19, %v3766_v48  ;;  %v1484_v12 = vsel %vm1478_vm9, %v1468_v42, %v3767_v39  ;;  %v1485_v53 = vsel %vm1478_vm9, %v1469_v38, %v3768_v52  ;;  %v3770_v26 = vld [vmem:[#allocation57_spill] sm:$0xff]  ;;  %v3771_v13 = vld [vmem:[#allocation58_spill] sm:$0xff]  ;;  %v3772_v2 = vld [vmem:[#allocation59_spill] sm:$0xff] }
 0x154   :  { %v1486_v43 = vsel %vm1478_vm9, %v1470_v57, %v3769_v56  ;;  %v1487_v24 = vsel %vm1478_vm9, %v1471_v41, %v3770_v26  ;;  %v1488_v14 = vsel %vm1478_vm9, %v1472_v49, %v3771_v13  ;;  %v1489_v61 = vsel %vm1478_vm9, %v1473_v9, %v3772_v2  ;;  %v3773_v7 = vld [vmem:[#allocation60_spill] sm:$0xff]  ;;  %v3774_v33 = vld [vmem:[#allocation61_spill] sm:$0xff]  ;;  %v3775_v27 = vld [vmem:[#allocation62_spill] sm:$0xff] }
 0x155   :  { %v1490_v19 = vsel %vm1478_vm9, %v1474_v30, %v3773_v7  ;;  %v1491_v42 = vsel %vm1478_vm9, %v1475_v31, %v3774_v33  ;;  %v1492_v38 = vsel %vm1478_vm9, %v1476_v63, %v3775_v27  ;;  %v3776_v6 = vld [vmem:[#allocation63_spill] sm:$0xff]  ;;  %v3777_v25 = vld [vmem:[#allocation64_spill] sm:$0xff]  ;;  %v3778_v21 = vld [vmem:[#allocation65_spill] sm:$0xff]  ;;  %v1499_v31 = vsel %vm1494_vm10, %v1483_v55, %v3097_v62 }
 0x156   :  { %v1493_v57 = vsel %vm1478_vm9, %v1477_v5, %v3776_v6  ;;  %v1495_v41 = vsel %vm1494_vm10, %v1479_v0, %v3777_v25  ;;  %v1496_v49 = vsel %vm1494_vm10, %v1480_v20, %v3778_v21  ;;  %v3779_v34 = vld [vmem:[#allocation66_spill] sm:$0xff]  ;;  %v3780_v1 = vld [vmem:[#allocation67_spill] sm:$0xff]  ;;  %v1500_v63 = vsel %vm1494_vm10, %v1484_v12, %v3099_v11  ;;  %v3781_v54 = vld [vmem:[#allocation68_spill] sm:$0xff] }
 0x157   :  { %v1497_v9 = vsel %vm1494_vm10, %v1481_v60, %v3779_v34  ;;  %v1498_v30 = vsel %vm1494_vm10, %v1482_v23, %v3780_v1  ;;  %v1501_v5 = vsel %vm1494_vm10, %v1485_v53, %v3103_v36  ;;  %v1502_v0 = vsel %vm1494_vm10, %v1486_v43, %v3105_v22 }
 0x158   :  { %v1503_v20 = vsel %vm1494_vm10, %v1487_v24, %v3109_v58  ;;  %v1504_v44 = vsel %vm1494_vm10, %v1488_v14, %v3117_v3  ;;  %v1505_v60 = vsel %vm1494_vm10, %v1489_v61, %v3119_v40  ;;  %v1506_v62 = vsel %vm1494_vm10, %v1490_v19, %v3781_v54 }
 0x159   :  { %v1507_v11 = vsel %vm1494_vm10, %v1491_v42, %v3127_v32  ;;  %v1508_v36 = vsel %vm1494_vm10, %v1492_v38, %v3133_v29  ;;  %v1509_v22 = vsel %vm1494_vm10, %v1493_v57, %v3135_v59  ;;  %v1511_v58 = vsel %vm1510_vm11, %v1495_v41, %v3139_v50 }
 0x15a   :  { %v1512_v3 = vsel %vm1510_vm11, %v1496_v49, %v3141_v28  ;;  %v1513_v40 = vsel %vm1510_vm11, %v1497_v9, %v3149_v16  ;;  %v1514_v23 = vsel %vm1510_vm11, %v1498_v30, %v3151_v37  ;;  %v1515_v32 = vsel %vm1510_vm11, %v1499_v31, %v3153_v10 }
 0x15b   :  { %v1516_v29 = vsel %vm1510_vm11, %v1500_v63, %v3159_v45  ;;  %v1517_v59 = vsel %vm1510_vm11, %v1501_v5, %v3165_v35  ;;  %v1518_v50 = vsel %vm1510_vm11, %v1502_v0, %v3167_v46  ;;  %v1519_v28 = vsel %vm1510_vm11, %v1503_v20, %v3171_v17 }
 0x15c   :  { %v1520_v16 = vsel %vm1510_vm11, %v1504_v44, %v3173_v15  ;;  %v1521_v37 = vsel %vm1510_vm11, %v1505_v60, %v3184_v51  ;;  %v1522_v10 = vsel %vm1510_vm11, %v1506_v62, %v3186_v4  ;;  %v1523_v45 = vsel %vm1510_vm11, %v1507_v11, %v3197_v8 }
 0x15d   :  { %v1524_v35 = vsel %vm1510_vm11, %v1508_v36, %v3214_v47  ;;  %v1525_v46 = vsel %vm1510_vm11, %v1509_v22, %v3240_v18  ;;  %v1526_v48 = vmax.f32 %v1511_v58, 0.0  ;;  %v1527_v17 = vmax.f32 %v1512_v3, 0.0 }
 0x15e   :  { %v1528_v55 = vmax.f32 %v1513_v40, 0.0  ;;  %v1529_v15 = vmax.f32 %v1514_v23, 0.0  ;;  %v1530_v39 = vmax.f32 %v1515_v32, 0.0  ;;  %v1531_v51 = vmax.f32 %v1516_v29, 0.0 }
 0x15f   :  { %v1532_v12 = vmax.f32 %v1517_v59, 0.0  ;;  %v1533_v52 = vmax.f32 %v1518_v50, 0.0  ;;  %v1534_v4 = vmax.f32 %v1519_v28, 0.0  ;;  %v1535_v53 = vmax.f32 %v1520_v16, 0.0  ;;  %1541 = vst [vmem:[#allocation5] sm:$0x7f] %v1526_v48 }
 0x160   :  { %v1536_v56 = vmax.f32 %v1521_v37, 0.0  ;;  %1542 = vst [vmem:[#allocation5 + $0x8] sm:$0x7f] %v1527_v17  ;;  %1543 = vst [vmem:[#allocation5 + $0x10] sm:$0x7f] %v1528_v55  ;;  %v1537_v8 = vmax.f32 %v1522_v10, 0.0 }
 0x161   :  { %v1538_v47 = vmax.f32 %v1523_v45, 0.0  ;;  %v1539_v43 = vmax.f32 %v1524_v35, 0.0  ;;  %v1540_v18 = vmax.f32 %v1525_v46, 0.0  ;;  %1544 = vst [vmem:[#allocation5 + $0x18] sm:$0x7f] %v1529_v15 }
 0x162   :  { %1545 = vst [vmem:[#allocation5 + $0x20] sm:$0x7f] %v1530_v39  ;;  %1546 = vst [vmem:[#allocation5 + $0x28] sm:$0x7f] %v1531_v51 }
 0x163   :  { %1547 = vst [vmem:[#allocation5 + $0x30] sm:$0x7f] %v1532_v12  ;;  %1548 = vst [vmem:[#allocation5 + $0x38] sm:$0x7f] %v1533_v52 }
 0x164   :  { %1549 = vst [vmem:[#allocation5 + $0x40] sm:$0x7f] %v1534_v4  ;;  %1550 = vst [vmem:[#allocation5 + $0x48] sm:$0x7f] %v1535_v53 }
 0x165   :  { %1551 = vst [vmem:[#allocation5 + $0x50] sm:$0x7f] %v1536_v56  ;;  %1552 = vst [vmem:[#allocation5 + $0x58] sm:$0x7f] %v1537_v8 }
 0x166   :  { %1553 = vst [vmem:[#allocation5 + $0x60] sm:$0x7f] %v1538_v47  ;;  %1554 = vst [vmem:[#allocation5 + $0x68] sm:$0x7f] %v1539_v43 }
 0x167   :  { %1555 = vst [vmem:[#allocation5 + $0x70] sm:$0x7f] %v1540_v18 }
 0x168   :  { %1610 = shalt.err (!%p1607_p12)
}
 0x169   :  { %s1611_s24 = scalar_lea.hbm %s3396_s1, 1920 }
 0x16a   :  { %p1612_p13 = scmp.ne.s32.totalorder %s3396_s1, %s1611_s24  ;;  %p1615_p0 = scmp.lt.u32.totalorder %s1611_s24, %s3396_s1 }
 0x16c   :  { %p1617_p1 = pnand %p1615_p0, %p1612_p13 }
 0x16e   :  { %1620 = shalt.err (!%p1617_p1)
}
 0x16f   :  { %1567 = dma.vmem_to_hbm [thread:$0]  %s1562_s20, 1920, %s3396_s1, [#allocation4], %s1626_s16, %s1626_s16, %s1627_s17  }
 0x170   :  { %1623 = dma.done.wait [#allocation4], 1920  }
 0x171   :  { %1624 = vsyncadd [#allocation4], 4294965376 }
 0x172   :  { %1571 = vsyncpa [#allocation3], 1 }
 0x173   :  { %1572 = vsyncpa [#allocation4], 1 }

</bundles_post_ra>
